<compile_context>
chip_gen: v7x
topology: tpu7x:2x2x1
jax: 0.10.0
libtpu: 0.0.40
codegen_flags: <defaults>
</compile_context>

<pallas_src>
import math
from functools import partial

import jax
import jax.numpy as jnp
from jax.experimental import pallas as pl
from jax.experimental.pallas import tpu as pltpu  # noqa: F401  (TPU backend)


# Row indices inside the packed "vecs" slab (each row zero-padded to width D).
(ROW_ATTN_OUT_B, ROW_N1_G, ROW_N1_B, ROW_EOUT_B, ROW_EN1_G, ROW_EN1_B,
 ROW_L1_B, ROW_L2_B, ROW_EN2_G, ROW_EN2_B) = range(10)
NUM_VEC_ROWS = 16  # padded to a sublane multiple


# ----------------------------------- kernel ------------------------------------

def transformer_block_kernel(q_ref, k_ref, v_ref,
                             w_in_ref, w_out_ref, w_ffn_ref, b_in_ref, vec_ref,
                             out_ref, *, S, B, E, H, HD):
    f32, bf16 = jnp.float32, jnp.bfloat16
    D = q_ref.shape[1]                         # padded lane width (128)
    scale = 1.0 / math.sqrt(HD)
    inv_e = 1.0 / E

    w_in = w_in_ref[...]                       # (D, 6E)  bf16
    w_out = w_out_ref[...]                     # (E, 2D)  bf16

    def vrow(r):                               # (1, D) f32 bias / gamma / beta row
        return vec_ref[r:r + 1, :]

    def layernorm(x, g, b, eps=1e-5):
        # x has exact zeros in the pad lanes; sum/E and E[x^2]-mu^2 ignore them.
        mu = jnp.sum(x, axis=-1, keepdims=True) * inv_e
        var = jnp.sum(x * x, axis=-1, keepdims=True) * inv_e - mu * mu
        # gamma/beta are zero-padded, so pad lanes come out exactly zero again.
        return (x - mu) * jax.lax.rsqrt(var + eps) * g + b

    def split_heads(y):                        # (B*S, H*HD) f32 -> (B*H, S, HD)
        parts = []
        for b in range(B):
            yb = y[b * S:(b + 1) * S, :]       # contiguous sublane slice (b-major rows)
            for h in range(H):
                parts.append(yb[:, h * HD:(h + 1) * HD][None])
        return jnp.concatenate(parts, axis=0)

    def merge_heads(c):                        # (B*H, S, HD) -> (B*S, H*HD)
        cols = [jnp.concatenate([c[b * H + h] for b in range(B)], axis=0)
                for h in range(H)]
        return jnp.concatenate(cols, axis=-1)

    def attention(q_p, k_p, v_p, w_o, b_o):
        qh = split_heads(q_p).astype(bf16)     # (B*H, S, HD)
        kh = split_heads(k_p).astype(bf16)
        vh = split_heads(v_p).astype(bf16)
        s = jax.lax.dot_general(qh, kh, (((2,), (2,)), ((0,), (0,))),
                                preferred_element_type=f32) * scale       # (B*H, S, S)
        s = s - jnp.max(s, axis=-1, keepdims=True)
        p = jnp.exp(s)
        p = p * pl.reciprocal(jnp.sum(p, axis=-1, keepdims=True), approx=True)
        ctx = jax.lax.dot_general(p.astype(bf16), vh, (((2,), (1,)), ((0,), (0,))),
                                  preferred_element_type=f32)              # (B*H, S, HD)
        ctx2 = merge_heads(ctx)                                            # (B*S, H*HD)
        # Fused out-projection + head-sum: one (B*S, E) @ (E, D) matmul.
        return jnp.dot(ctx2.astype(bf16), w_o, preferred_element_type=f32) + b_o

    q2 = q_ref[...]                            # (B*S, D) f32, b-major rows, zero pads
    k2 = k_ref[...]
    v2 = v_ref[...]
    q2b, k2b, v2b = q2.astype(bf16), k2.astype(bf16), v2.astype(bf16)

    # 1) attention = MultiheadAttention(query, key, value)
    q_p = jnp.dot(q2b, w_in[:, 0:E], preferred_element_type=f32) + b_in_ref[0:1, 0:E]
    k_p = jnp.dot(k2b, w_in[:, E:2 * E], preferred_element_type=f32) + b_in_ref[0:1, E:2 * E]
    v_p = jnp.dot(v2b, w_in[:, 2 * E:3 * E], preferred_element_type=f32) + b_in_ref[0:1, 2 * E:3 * E]
    attn = attention(q_p, k_p, v_p, w_out[:, 0:D], vrow(ROW_ATTN_OUT_B))

    # 2) norm_attention = LayerNorm(query + attention)
    x1 = layernorm(q2 + attn, vrow(ROW_N1_G), vrow(ROW_N1_B))

    # 3) TransformerEncoderLayer self-attention (fused QKV: ONE 192-wide... here 96-wide matmul)
    x1b = x1.astype(bf16)
    qkv = jnp.dot(x1b, w_in[:, 3 * E:6 * E], preferred_element_type=f32) + b_in_ref[1:2, :]
    sa = attention(qkv[:, 0:E], qkv[:, E:2 * E], qkv[:, 2 * E:3 * E],
                   w_out[:, D:2 * D], vrow(ROW_EOUT_B))
    x2 = layernorm(x1 + sa, vrow(ROW_EN1_G), vrow(ROW_EN1_B))

    # 4) FFN (ReLU); dropout = identity in eval mode
    x2b = x2.astype(bf16)
    hmid = jnp.dot(x2b, w_ffn_ref[0:D, :], preferred_element_type=f32) + vrow(ROW_L1_B)
    hmid = jnp.maximum(hmid, 0.0)
    y = jnp.dot(hmid.astype(bf16), w_ffn_ref[D:2 * D, :],
                preferred_element_type=f32) + vrow(ROW_L2_B)

    out_ref[...] = layernorm(x2 + y, vrow(ROW_EN2_G), vrow(ROW_EN2_B))


# ---------------------- one-time parameter repacking (host) ----------------------

def preprocess_params(p, num_heads):
    """Hoisted out of the forward: transposes, lane-dense packing, zero padding."""
    E = p["attn_out_w"].shape[0]
    FF = p["enc_lin1_w"].shape[0]
    D = ((max(E, FF) + 127) // 128) * 128      # padded lane width (128 here)

    def pad2(m, rows, cols):
        return jnp.pad(m, ((0, rows - m.shape[0]), (0, cols - m.shape[1])))

    a_w, a_b = p["attn_in_w"], p["attn_in_b"]
    e_w, e_b = p["enc_attn_in_w"], p["enc_attn_in_b"]

    # In-projection weights of both attentions, transposed to (E_in, E_out) and packed
    # column-wise into one lane-dense (D, 6E) slab (contraction rows >= E are zero).
    w_in = jnp.concatenate(
        [a_w[0:E].T, a_w[E:2 * E].T, a_w[2 * E:3 * E].T,
         e_w[0:E].T, e_w[E:2 * E].T, e_w[2 * E:3 * E].T], axis=1)          # (E, 6E)
    w_in = pad2(w_in, D, 6 * E).astype(jnp.bfloat16)                       # (D, 6E)

    # In-projection biases: row 0 = attention-1 [bq|bk|bv], row 1 = encoder [bq|bk|bv].
    b_in = jnp.stack([a_b, e_b], axis=0).astype(jnp.float32)               # (2, 3E)

    # Out-projection weights: heads along the contraction dim, output cols padded to D.
    w_out = jnp.concatenate(
        [pad2(p["attn_out_w"].T, E, D), pad2(p["enc_attn_out_w"].T, E, D)],
        axis=1).astype(jnp.bfloat16)                                       # (E, 2D)

    # FFN weights: rows 0:D = lin1, rows D:2D = lin2 (both zero-padded to (D, D)).
    w_ffn = jnp.concatenate(
        [pad2(p["enc_lin1_w"].T, D, D), pad2(p["enc_lin2_w"].T, D, D)],
        axis=0).astype(jnp.bfloat16)                                       # (2D, D)

    def row(vv):
        return jnp.pad(vv, (0, D - vv.shape[0]))

    vecs = jnp.stack(
        [row(p["attn_out_b"]), row(p["norm1_g"]), row(p["norm1_b"]),
         row(p["enc_attn_out_b"]), row(p["enc_norm1_g"]), row(p["enc_norm1_b"]),
         row(p["enc_lin1_b"]), row(p["enc_lin2_b"]),
         row(p["enc_norm2_g"]), row(p["enc_norm2_b"])], axis=0).astype(jnp.float32)
    vecs = jnp.pad(vecs, ((0, NUM_VEC_ROWS - vecs.shape[0]), (0, 0)))      # (16, D)

    return dict(w_in=w_in, w_out=w_out, w_ffn=w_ffn, b_in=b_in, vecs=vecs)


# ----------------------------------- wrapper ------------------------------------

@partial(jax.jit, static_argnames=("num_heads",))
def _forward(value, key, query, w_in, w_out, w_ffn, b_in, vecs, *, num_heads):
    S, B, E = query.shape
    D = w_in.shape[0]
    H = num_heads
    HD = E // H

    def rows(x):  # (S, B, E) -> (B*S, D): b-major rows, lane-padded (tiny fused copy)
        xb = jnp.transpose(x, (1, 0, 2)).reshape(B * S, E)
        return jnp.pad(xb, ((0, 0), (0, D - E)))

    kernel = partial(transformer_block_kernel, S=S, B=B, E=E, H=H, HD=HD)

    cost = pl.CostEstimate(
        flops=int(2 * B * S * D * (6 * E + 2 * D + 2 * D) + 4 * B * H * S * S * HD),
        transcendentals=int(2 * B * H * S * S + 4 * B * S),
        bytes_accessed=int(4 * 4 * B * S * D
                           + 2 * (w_in.size + w_out.size + w_ffn.size)
                           + 4 * (b_in.size + vecs.size)),
    )

    out2 = pl.pallas_call(
        kernel,
        out_shape=jax.ShapeDtypeStruct((B * S, D), jnp.float32),
        cost_estimate=cost,
    )(rows(query), rows(key), rows(value), w_in, w_out, w_ffn, b_in, vecs)

    return out2[:, :E].reshape(B, S, E).transpose(1, 0, 2)


def transformer_block_forward(value, key, query, prep, *, num_heads):
    """value/key/query: (S, B, E) float32. Returns (S, B, E) float32."""
    return _forward(value, key, query, prep["w_in"], prep["w_out"], prep["w_ffn"],
                    prep["b_in"], prep["vecs"], num_heads=num_heads)


# ------------------------- pure-JAX reference (eval mode) -------------------------

def _ref_layernorm(x, g, b, eps=1e-5):
    mu = x.mean(-1, keepdims=True)
    var = ((x - mu) ** 2).mean(-1, keepdims=True)
    return (x - mu) / jnp.sqrt(var + eps) * g + b


def _ref_mha(q, k, v, w_in, b_in, w_out, b_out, H):
    S, B, E = q.shape
    hd = E // H
    qp = q @ w_in[0:E].T + b_in[0:E]
    kp = k @ w_in[E:2 * E].T + b_in[E:2 * E]
    vp = v @ w_in[2 * E:].T + b_in[2 * E:]

    def split(x):  # (S,B,E) -> (B,H,S,hd)
        return x.reshape(S, B, H, hd).transpose(1, 2, 0, 3)

    qh, kh, vh = split(qp), split(kp), split(vp)
    s = jnp.einsum("bhsd,bhtd->bhst", qh, kh) / math.sqrt(hd)
    a = jax.nn.softmax(s, axis=-1)
    o = jnp.einsum("bhst,bhtd->bhsd", a, vh)
    o = o.transpose(2, 0, 1, 3).reshape(S, B, E)
    return o @ w_out.T + b_out


def reference_forward(value, key, query, p, H):
    attn = _ref_mha(query, key, value,
                    p["attn_in_w"], p["attn_in_b"], p["attn_out_w"], p["attn_out_b"], H)
    x = _ref_layernorm(query + attn, p["norm1_g"], p["norm1_b"])
    sa = _ref_mha(x, x, x,
                  p["enc_attn_in_w"], p["enc_attn_in_b"],
                  p["enc_attn_out_w"], p["enc_attn_out_b"], H)
    x = _ref_layernorm(x + sa, p["enc_norm1_g"], p["enc_norm1_b"])
    ff = jax.nn.relu(x @ p["enc_lin1_w"].T + p["enc_lin1_b"]) @ p["enc_lin2_w"].T + p["enc_lin2_b"]
    return _ref_layernorm(x + ff, p["enc_norm2_g"], p["enc_norm2_b"])


# --------------------------------- param init ---------------------------------

def init_params(key, E, FF):
    ks = jax.random.split(key, 12)

    def w(k, shape, scale=0.05):
        return (scale * jax.random.normal(k, shape)).astype(jnp.float32)

    return dict(
        attn_in_w=w(ks[0], (3 * E, E)),
        attn_in_b=w(ks[1], (3 * E,), 0.02),
        attn_out_w=w(ks[2], (E, E)),
        attn_out_b=w(ks[3], (E,), 0.02),
        norm1_g=jnp.ones((E,), jnp.float32),
        norm1_b=jnp.zeros((E,), jnp.float32),
        enc_attn_in_w=w(ks[4], (3 * E, E)),
        enc_attn_in_b=w(ks[5], (3 * E,), 0.02),
        enc_attn_out_w=w(ks[6], (E, E)),
        enc_attn_out_b=w(ks[7], (E,), 0.02),
        enc_lin1_w=w(ks[8], (FF, E)),
        enc_lin1_b=w(ks[9], (FF,), 0.02),
        enc_lin2_w=w(ks[10], (E, FF)),
        enc_lin2_b=w(ks[11], (E,), 0.02),
        enc_norm1_g=jnp.ones((E,), jnp.float32),
        enc_norm1_b=jnp.zeros((E,), jnp.float32),
        enc_norm2_g=jnp.ones((E,), jnp.float32),
        enc_norm2_b=jnp.zeros((E,), jnp.float32),
    )


# ------------------------------------ main ------------------------------------

if __name__ == "__main__":
    EMBED_DIM = 32
    NUM_HEADS = 4
    FORWARD_EXPANSION = 4
    SEQ = 8
    BATCH = 2
    FF = EMBED_DIM * FORWARD_EXPANSION

    root = jax.random.PRNGKey(0)
    k_v, k_k, k_q, k_p = jax.random.split(root, 4)
    value = jax.random.normal(k_v, (SEQ, BATCH, EMBED_DIM), jnp.float32)
    key_t = jax.random.normal(k_k, (SEQ, BATCH, EMBED_DIM), jnp.float32)
    query = jax.random.normal(k_q, (SEQ, BATCH, EMBED_DIM), jnp.float32)
    params = init_params(k_p, EMBED_DIM, FF)

    # One-time repacking (transposes / lane-dense slabs / zero padding) — not per forward.
    prep = preprocess_params(params, NUM_HEADS)
    prep = {k: jax.block_until_ready(v) for k, v in prep.items()}

    out = transformer_block_forward(value, key_t, query, prep, num_heads=NUM_HEADS)
    out = jax.block_until_ready(out)

    ref = reference_forward(value, key_t, query, params, NUM_HEADS)
    ref = jax.block_until_ready(ref)

    assert out.shape == (SEQ, BATCH, EMBED_DIM)
    # bf16 matmul operands + approx reciprocal in the kernel vs. f32 reference.
    assert jnp.allclose(out, ref, rtol=2e-2, atol=2e-2), (
        f"max abs diff = {jnp.max(jnp.abs(out - ref))}")

    print("KERNEL_OK")
</pallas_src>

<mosaic_0001>
module attributes {stable_mosaic.version = 11 : i64} {
  func.func @transformer_block_kernel(%arg0: memref<16x128xf32, #tpu.memory_space<vmem>>, %arg1: memref<16x128xf32, #tpu.memory_space<vmem>>, %arg2: memref<16x128xf32, #tpu.memory_space<vmem>>, %arg3: memref<128x192xbf16, #tpu.memory_space<vmem>>, %arg4: memref<32x256xbf16, #tpu.memory_space<vmem>>, %arg5: memref<256x128xbf16, #tpu.memory_space<vmem>>, %arg6: memref<2x96xf32, #tpu.memory_space<vmem>>, %arg7: memref<16x128xf32, #tpu.memory_space<vmem>>, %arg8: memref<16x128xf32, #tpu.memory_space<vmem>>) attributes {dimension_semantics = [], scalar_prefetch = 0 : i64, scratch_operands = 0 : i64, tpu.core_type = #tpu.core_type<tc>} {
    %c0 = arith.constant 0 : index
    %c0_0 = arith.constant 0 : index
    %0 = vector.load %arg3[%c0, %c0_0] : memref<128x192xbf16, #tpu.memory_space<vmem>>, vector<128x192xbf16>
    %c0_1 = arith.constant 0 : index
    %c0_2 = arith.constant 0 : index
    %1 = vector.load %arg4[%c0_1, %c0_2] : memref<32x256xbf16, #tpu.memory_space<vmem>>, vector<32x256xbf16>
    %c0_3 = arith.constant 0 : index
    %c0_4 = arith.constant 0 : index
    %2 = vector.load %arg0[%c0_3, %c0_4] : memref<16x128xf32, #tpu.memory_space<vmem>>, vector<16x128xf32>
    %c0_5 = arith.constant 0 : index
    %c0_6 = arith.constant 0 : index
    %3 = vector.load %arg1[%c0_5, %c0_6] : memref<16x128xf32, #tpu.memory_space<vmem>>, vector<16x128xf32>
    %c0_7 = arith.constant 0 : index
    %c0_8 = arith.constant 0 : index
    %4 = vector.load %arg2[%c0_7, %c0_8] : memref<16x128xf32, #tpu.memory_space<vmem>>, vector<16x128xf32>
    %5 = arith.truncf %2 : vector<16x128xf32> to vector<16x128xbf16>
    %6 = arith.truncf %3 : vector<16x128xf32> to vector<16x128xbf16>
    %7 = arith.truncf %4 : vector<16x128xf32> to vector<16x128xbf16>
    %8 = vector.extract_strided_slice %0 {offsets = [0, 0], sizes = [128, 32], strides = [1, 1]} : vector<128x192xbf16> to vector<128x32xbf16>
    %cst = arith.constant dense<0.000000e+00> : vector<16x32xf32>
    %9 = tpu.matmul %5, %8, %cst {dimension_numbers = #tpu.dot_dimension_numbers<[1], [0], [0], [1], [0, 0, 1, 1], [], []>} : vector<16x128xbf16>, vector<128x32xbf16>, vector<16x32xf32> -> vector<16x32xf32>
    %c0_9 = arith.constant 0 : index
    %c0_10 = arith.constant 0 : index
    %10 = vector.load %arg6[%c0_9, %c0_10] : memref<2x96xf32, #tpu.memory_space<vmem>>, vector<1x32xf32>
    %11 = vector.broadcast %10 : vector<1x32xf32> to vector<16x32xf32>
    %12 = arith.addf %9, %11 : vector<16x32xf32>
    %13 = vector.extract_strided_slice %0 {offsets = [0, 32], sizes = [128, 32], strides = [1, 1]} : vector<128x192xbf16> to vector<128x32xbf16>
    %cst_11 = arith.constant dense<0.000000e+00> : vector<16x32xf32>
    %14 = tpu.matmul %6, %13, %cst_11 {dimension_numbers = #tpu.dot_dimension_numbers<[1], [0], [0], [1], [0, 0, 1, 1], [], []>} : vector<16x128xbf16>, vector<128x32xbf16>, vector<16x32xf32> -> vector<16x32xf32>
    %c0_12 = arith.constant 0 : index
    %c32 = arith.constant 32 : index
    %15 = vector.load %arg6[%c0_12, %c32] : memref<2x96xf32, #tpu.memory_space<vmem>>, vector<1x32xf32>
    %16 = vector.broadcast %15 : vector<1x32xf32> to vector<16x32xf32>
    %17 = arith.addf %14, %16 : vector<16x32xf32>
    %18 = vector.extract_strided_slice %0 {offsets = [0, 64], sizes = [128, 32], strides = [1, 1]} : vector<128x192xbf16> to vector<128x32xbf16>
    %cst_13 = arith.constant dense<0.000000e+00> : vector<16x32xf32>
    %19 = tpu.matmul %7, %18, %cst_13 {dimension_numbers = #tpu.dot_dimension_numbers<[1], [0], [0], [1], [0, 0, 1, 1], [], []>} : vector<16x128xbf16>, vector<128x32xbf16>, vector<16x32xf32> -> vector<16x32xf32>
    %c0_14 = arith.constant 0 : index
    %c64 = arith.constant 64 : index
    %20 = vector.load %arg6[%c0_14, %c64] : memref<2x96xf32, #tpu.memory_space<vmem>>, vector<1x32xf32>
    %21 = vector.broadcast %20 : vector<1x32xf32> to vector<16x32xf32>
    %22 = arith.addf %19, %21 : vector<16x32xf32>
    %23 = vector.extract_strided_slice %1 {offsets = [0, 0], sizes = [32, 128], strides = [1, 1]} : vector<32x256xbf16> to vector<32x128xbf16>
    %c0_15 = arith.constant 0 : index
    %c0_16 = arith.constant 0 : index
    %24 = vector.load %arg7[%c0_15, %c0_16] : memref<16x128xf32, #tpu.memory_space<vmem>>, vector<1x128xf32>
    %25 = vector.extract_strided_slice %12 {offsets = [0, 0], sizes = [8, 32], strides = [1, 1]} : vector<16x32xf32> to vector<8x32xf32>
    %26 = vector.extract_strided_slice %25 {offsets = [0, 0], sizes = [8, 8], strides = [1, 1]} : vector<8x32xf32> to vector<8x8xf32>
    %27 = vector.shape_cast %26 : vector<8x8xf32> to vector<1x8x8xf32>
    %28 = vector.extract_strided_slice %25 {offsets = [0, 8], sizes = [8, 8], strides = [1, 1]} : vector<8x32xf32> to vector<8x8xf32>
    %29 = vector.shape_cast %28 : vector<8x8xf32> to vector<1x8x8xf32>
    %30 = vector.extract_strided_slice %25 {offsets = [0, 16], sizes = [8, 8], strides = [1, 1]} : vector<8x32xf32> to vector<8x8xf32>
    %31 = vector.shape_cast %30 : vector<8x8xf32> to vector<1x8x8xf32>
    %32 = vector.extract_strided_slice %25 {offsets = [0, 24], sizes = [8, 8], strides = [1, 1]} : vector<8x32xf32> to vector<8x8xf32>
    %33 = vector.shape_cast %32 : vector<8x8xf32> to vector<1x8x8xf32>
    %34 = vector.extract_strided_slice %12 {offsets = [8, 0], sizes = [8, 32], strides = [1, 1]} : vector<16x32xf32> to vector<8x32xf32>
    %35 = vector.extract_strided_slice %34 {offsets = [0, 0], sizes = [8, 8], strides = [1, 1]} : vector<8x32xf32> to vector<8x8xf32>
    %36 = vector.shape_cast %35 : vector<8x8xf32> to vector<1x8x8xf32>
    %37 = vector.extract_strided_slice %34 {offsets = [0, 8], sizes = [8, 8], strides = [1, 1]} : vector<8x32xf32> to vector<8x8xf32>
    %38 = vector.shape_cast %37 : vector<8x8xf32> to vector<1x8x8xf32>
    %39 = vector.extract_strided_slice %34 {offsets = [0, 16], sizes = [8, 8], strides = [1, 1]} : vector<8x32xf32> to vector<8x8xf32>
    %40 = vector.shape_cast %39 : vector<8x8xf32> to vector<1x8x8xf32>
    %41 = vector.extract_strided_slice %34 {offsets = [0, 24], sizes = [8, 8], strides = [1, 1]} : vector<8x32xf32> to vector<8x8xf32>
    %42 = vector.shape_cast %41 : vector<8x8xf32> to vector<1x8x8xf32>
    %43 = tpu.concatenate %27, %29, %31, %33, %36, %38, %40, %42 in 0 : vector<1x8x8xf32>, vector<1x8x8xf32>, vector<1x8x8xf32>, vector<1x8x8xf32>, vector<1x8x8xf32>, vector<1x8x8xf32>, vector<1x8x8xf32>, vector<1x8x8xf32> -> vector<8x8x8xf32>
    %44 = arith.truncf %43 : vector<8x8x8xf32> to vector<8x8x8xbf16>
    %45 = vector.extract_strided_slice %17 {offsets = [0, 0], sizes = [8, 32], strides = [1, 1]} : vector<16x32xf32> to vector<8x32xf32>
    %46 = vector.extract_strided_slice %45 {offsets = [0, 0], sizes = [8, 8], strides = [1, 1]} : vector<8x32xf32> to vector<8x8xf32>
    %47 = vector.shape_cast %46 : vector<8x8xf32> to vector<1x8x8xf32>
    %48 = vector.extract_strided_slice %45 {offsets = [0, 8], sizes = [8, 8], strides = [1, 1]} : vector<8x32xf32> to vector<8x8xf32>
    %49 = vector.shape_cast %48 : vector<8x8xf32> to vector<1x8x8xf32>
    %50 = vector.extract_strided_slice %45 {offsets = [0, 16], sizes = [8, 8], strides = [1, 1]} : vector<8x32xf32> to vector<8x8xf32>
    %51 = vector.shape_cast %50 : vector<8x8xf32> to vector<1x8x8xf32>
    %52 = vector.extract_strided_slice %45 {offsets = [0, 24], sizes = [8, 8], strides = [1, 1]} : vector<8x32xf32> to vector<8x8xf32>
    %53 = vector.shape_cast %52 : vector<8x8xf32> to vector<1x8x8xf32>
    %54 = vector.extract_strided_slice %17 {offsets = [8, 0], sizes = [8, 32], strides = [1, 1]} : vector<16x32xf32> to vector<8x32xf32>
    %55 = vector.extract_strided_slice %54 {offsets = [0, 0], sizes = [8, 8], strides = [1, 1]} : vector<8x32xf32> to vector<8x8xf32>
    %56 = vector.shape_cast %55 : vector<8x8xf32> to vector<1x8x8xf32>
    %57 = vector.extract_strided_slice %54 {offsets = [0, 8], sizes = [8, 8], strides = [1, 1]} : vector<8x32xf32> to vector<8x8xf32>
    %58 = vector.shape_cast %57 : vector<8x8xf32> to vector<1x8x8xf32>
    %59 = vector.extract_strided_slice %54 {offsets = [0, 16], sizes = [8, 8], strides = [1, 1]} : vector<8x32xf32> to vector<8x8xf32>
    %60 = vector.shape_cast %59 : vector<8x8xf32> to vector<1x8x8xf32>
    %61 = vector.extract_strided_slice %54 {offsets = [0, 24], sizes = [8, 8], strides = [1, 1]} : vector<8x32xf32> to vector<8x8xf32>
    %62 = vector.shape_cast %61 : vector<8x8xf32> to vector<1x8x8xf32>
    %63 = tpu.concatenate %47, %49, %51, %53, %56, %58, %60, %62 in 0 : vector<1x8x8xf32>, vector<1x8x8xf32>, vector<1x8x8xf32>, vector<1x8x8xf32>, vector<1x8x8xf32>, vector<1x8x8xf32>, vector<1x8x8xf32>, vector<1x8x8xf32> -> vector<8x8x8xf32>
    %64 = arith.truncf %63 : vector<8x8x8xf32> to vector<8x8x8xbf16>
    %65 = vector.extract_strided_slice %22 {offsets = [0, 0], sizes = [8, 32], strides = [1, 1]} : vector<16x32xf32> to vector<8x32xf32>
    %66 = vector.extract_strided_slice %65 {offsets = [0, 0], sizes = [8, 8], strides = [1, 1]} : vector<8x32xf32> to vector<8x8xf32>
    %67 = vector.shape_cast %66 : vector<8x8xf32> to vector<1x8x8xf32>
    %68 = vector.extract_strided_slice %65 {offsets = [0, 8], sizes = [8, 8], strides = [1, 1]} : vector<8x32xf32> to vector<8x8xf32>
    %69 = vector.shape_cast %68 : vector<8x8xf32> to vector<1x8x8xf32>
    %70 = vector.extract_strided_slice %65 {offsets = [0, 16], sizes = [8, 8], strides = [1, 1]} : vector<8x32xf32> to vector<8x8xf32>
    %71 = vector.shape_cast %70 : vector<8x8xf32> to vector<1x8x8xf32>
    %72 = vector.extract_strided_slice %65 {offsets = [0, 24], sizes = [8, 8], strides = [1, 1]} : vector<8x32xf32> to vector<8x8xf32>
    %73 = vector.shape_cast %72 : vector<8x8xf32> to vector<1x8x8xf32>
    %74 = vector.extract_strided_slice %22 {offsets = [8, 0], sizes = [8, 32], strides = [1, 1]} : vector<16x32xf32> to vector<8x32xf32>
    %75 = vector.extract_strided_slice %74 {offsets = [0, 0], sizes = [8, 8], strides = [1, 1]} : vector<8x32xf32> to vector<8x8xf32>
    %76 = vector.shape_cast %75 : vector<8x8xf32> to vector<1x8x8xf32>
    %77 = vector.extract_strided_slice %74 {offsets = [0, 8], sizes = [8, 8], strides = [1, 1]} : vector<8x32xf32> to vector<8x8xf32>
    %78 = vector.shape_cast %77 : vector<8x8xf32> to vector<1x8x8xf32>
    %79 = vector.extract_strided_slice %74 {offsets = [0, 16], sizes = [8, 8], strides = [1, 1]} : vector<8x32xf32> to vector<8x8xf32>
    %80 = vector.shape_cast %79 : vector<8x8xf32> to vector<1x8x8xf32>
    %81 = vector.extract_strided_slice %74 {offsets = [0, 24], sizes = [8, 8], strides = [1, 1]} : vector<8x32xf32> to vector<8x8xf32>
    %82 = vector.shape_cast %81 : vector<8x8xf32> to vector<1x8x8xf32>
    %83 = tpu.concatenate %67, %69, %71, %73, %76, %78, %80, %82 in 0 : vector<1x8x8xf32>, vector<1x8x8xf32>, vector<1x8x8xf32>, vector<1x8x8xf32>, vector<1x8x8xf32>, vector<1x8x8xf32>, vector<1x8x8xf32>, vector<1x8x8xf32> -> vector<8x8x8xf32>
    %84 = arith.truncf %83 : vector<8x8x8xf32> to vector<8x8x8xbf16>
    %cst_17 = arith.constant dense<0.000000e+00> : vector<8x8x8xf32>
    %85 = tpu.matmul %44, %64, %cst_17 {dimension_numbers = #tpu.dot_dimension_numbers<[2], [2], [1], [1], [0, 0, 0, 1, 1, 1], [0], [0]>} : vector<8x8x8xbf16>, vector<8x8x8xbf16>, vector<8x8x8xf32> -> vector<8x8x8xf32>
    %cst_18 = arith.constant 0.353553385 : f32
    %86 = vector.broadcast %cst_18 : f32 to vector<8x8x8xf32>
    %87 = arith.mulf %85, %86 : vector<8x8x8xf32>
    %cst_19 = arith.constant dense<0xFF800000> : vector<8x8xf32>
    %88 = vector.multi_reduction <maximumf>, %87, %cst_19 [2] : vector<8x8x8xf32> to vector<8x8xf32>
    %89 = vector.shape_cast %88 : vector<8x8xf32> to vector<8x8x1xf32>
    %90 = vector.broadcast %89 : vector<8x8x1xf32> to vector<8x8x8xf32>
    %91 = arith.subf %87, %90 : vector<8x8x8xf32>
    %92 = math.exp %91 : vector<8x8x8xf32>
    %cst_20 = arith.constant dense<0.000000e+00> : vector<8x8xf32>
    %93 = vector.multi_reduction <add>, %92, %cst_20 [2] : vector<8x8x8xf32> to vector<8x8xf32>
    %94 = vector.shape_cast %93 : vector<8x8xf32> to vector<8x8x1xf32>
    %95 = tpu.reciprocal %94 {approx = true} : vector<8x8x1xf32> -> vector<8x8x1xf32>
    %96 = vector.broadcast %95 : vector<8x8x1xf32> to vector<8x8x8xf32>
    %97 = arith.mulf %92, %96 : vector<8x8x8xf32>
    %98 = arith.truncf %97 : vector<8x8x8xf32> to vector<8x8x8xbf16>
    %cst_21 = arith.constant dense<0.000000e+00> : vector<8x8x8xf32>
    %99 = tpu.matmul %98, %84, %cst_21 {dimension_numbers = #tpu.dot_dimension_numbers<[2], [1], [1], [2], [0, 0, 0, 1, 1, 2], [0], [0]>} : vector<8x8x8xbf16>, vector<8x8x8xbf16>, vector<8x8x8xf32> -> vector<8x8x8xf32>
    %100 = vector.extract_strided_slice %99 {offsets = [0, 0, 0], sizes = [1, 8, 8], strides = [1, 1, 1]} : vector<8x8x8xf32> to vector<1x8x8xf32>
    %101 = vector.shape_cast %100 : vector<1x8x8xf32> to vector<8x8xf32>
    %102 = vector.extract_strided_slice %99 {offsets = [4, 0, 0], sizes = [1, 8, 8], strides = [1, 1, 1]} : vector<8x8x8xf32> to vector<1x8x8xf32>
    %103 = vector.shape_cast %102 : vector<1x8x8xf32> to vector<8x8xf32>
    %104 = tpu.concatenate %101, %103 in 0 : vector<8x8xf32>, vector<8x8xf32> -> vector<16x8xf32>
    %105 = vector.extract_strided_slice %99 {offsets = [1, 0, 0], sizes = [1, 8, 8], strides = [1, 1, 1]} : vector<8x8x8xf32> to vector<1x8x8xf32>
    %106 = vector.shape_cast %105 : vector<1x8x8xf32> to vector<8x8xf32>
    %107 = vector.extract_strided_slice %99 {offsets = [5, 0, 0], sizes = [1, 8, 8], strides = [1, 1, 1]} : vector<8x8x8xf32> to vector<1x8x8xf32>
    %108 = vector.shape_cast %107 : vector<1x8x8xf32> to vector<8x8xf32>
    %109 = tpu.concatenate %106, %108 in 0 : vector<8x8xf32>, vector<8x8xf32> -> vector<16x8xf32>
    %110 = vector.extract_strided_slice %99 {offsets = [2, 0, 0], sizes = [1, 8, 8], strides = [1, 1, 1]} : vector<8x8x8xf32> to vector<1x8x8xf32>
    %111 = vector.shape_cast %110 : vector<1x8x8xf32> to vector<8x8xf32>
    %112 = vector.extract_strided_slice %99 {offsets = [6, 0, 0], sizes = [1, 8, 8], strides = [1, 1, 1]} : vector<8x8x8xf32> to vector<1x8x8xf32>
    %113 = vector.shape_cast %112 : vector<1x8x8xf32> to vector<8x8xf32>
    %114 = tpu.concatenate %111, %113 in 0 : vector<8x8xf32>, vector<8x8xf32> -> vector<16x8xf32>
    %115 = vector.extract_strided_slice %99 {offsets = [3, 0, 0], sizes = [1, 8, 8], strides = [1, 1, 1]} : vector<8x8x8xf32> to vector<1x8x8xf32>
    %116 = vector.shape_cast %115 : vector<1x8x8xf32> to vector<8x8xf32>
    %117 = vector.extract_strided_slice %99 {offsets = [7, 0, 0], sizes = [1, 8, 8], strides = [1, 1, 1]} : vector<8x8x8xf32> to vector<1x8x8xf32>
    %118 = vector.shape_cast %117 : vector<1x8x8xf32> to vector<8x8xf32>
    %119 = tpu.concatenate %116, %118 in 0 : vector<8x8xf32>, vector<8x8xf32> -> vector<16x8xf32>
    %120 = tpu.concatenate %104, %109, %114, %119 in 1 : vector<16x8xf32>, vector<16x8xf32>, vector<16x8xf32>, vector<16x8xf32> -> vector<16x32xf32>
    %121 = arith.truncf %120 : vector<16x32xf32> to vector<16x32xbf16>
    %cst_22 = arith.constant dense<0.000000e+00> : vector<16x128xf32>
    %122 = tpu.matmul %121, %23, %cst_22 {dimension_numbers = #tpu.dot_dimension_numbers<[1], [0], [0], [1], [0, 0, 1, 1], [], []>} : vector<16x32xbf16>, vector<32x128xbf16>, vector<16x128xf32> -> vector<16x128xf32>
    %123 = vector.broadcast %24 : vector<1x128xf32> to vector<16x128xf32>
    %124 = arith.addf %122, %123 : vector<16x128xf32>
    %125 = arith.addf %2, %124 : vector<16x128xf32>
    %c1 = arith.constant 1 : index
    %c0_23 = arith.constant 0 : index
    %126 = vector.load %arg7[%c1, %c0_23] : memref<16x128xf32, #tpu.memory_space<vmem>>, vector<1x128xf32>
    %c2 = arith.constant 2 : index
    %c0_24 = arith.constant 0 : index
    %127 = vector.load %arg7[%c2, %c0_24] : memref<16x128xf32, #tpu.memory_space<vmem>>, vector<1x128xf32>
    %cst_25 = arith.constant dense<0.000000e+00> : vector<16xf32>
    %128 = vector.multi_reduction <add>, %125, %cst_25 [1] : vector<16x128xf32> to vector<16xf32>
    %129 = vector.shape_cast %128 : vector<16xf32> to vector<16x1xf32>
    %cst_26 = arith.constant 3.125000e-02 : f32
    %130 = vector.broadcast %cst_26 : f32 to vector<16x1xf32>
    %131 = arith.mulf %129, %130 : vector<16x1xf32>
    %132 = arith.mulf %125, %125 : vector<16x128xf32>
    %cst_27 = arith.constant dense<0.000000e+00> : vector<16xf32>
    %133 = vector.multi_reduction <add>, %132, %cst_27 [1] : vector<16x128xf32> to vector<16xf32>
    %134 = vector.shape_cast %133 : vector<16xf32> to vector<16x1xf32>
    %cst_28 = arith.constant 3.125000e-02 : f32
    %135 = vector.broadcast %cst_28 : f32 to vector<16x1xf32>
    %136 = arith.mulf %134, %135 : vector<16x1xf32>
    %137 = arith.mulf %131, %131 : vector<16x1xf32>
    %138 = arith.subf %136, %137 : vector<16x1xf32>
    %139 = vector.broadcast %131 : vector<16x1xf32> to vector<16x128xf32>
    %140 = arith.subf %125, %139 : vector<16x128xf32>
    %cst_29 = arith.constant 9.99999974E-6 : f32
    %141 = vector.broadcast %cst_29 : f32 to vector<16x1xf32>
    %142 = arith.addf %138, %141 : vector<16x1xf32>
    %143 = math.rsqrt %142 : vector<16x1xf32>
    %144 = vector.broadcast %143 : vector<16x1xf32> to vector<16x128xf32>
    %145 = arith.mulf %140, %144 : vector<16x128xf32>
    %146 = vector.broadcast %126 : vector<1x128xf32> to vector<16x128xf32>
    %147 = arith.mulf %145, %146 : vector<16x128xf32>
    %148 = vector.broadcast %127 : vector<1x128xf32> to vector<16x128xf32>
    %149 = arith.addf %147, %148 : vector<16x128xf32>
    %150 = arith.truncf %149 : vector<16x128xf32> to vector<16x128xbf16>
    %151 = vector.extract_strided_slice %0 {offsets = [0, 96], sizes = [128, 96], strides = [1, 1]} : vector<128x192xbf16> to vector<128x96xbf16>
    %cst_30 = arith.constant dense<0.000000e+00> : vector<16x96xf32>
    %152 = tpu.matmul %150, %151, %cst_30 {dimension_numbers = #tpu.dot_dimension_numbers<[1], [0], [0], [1], [0, 0, 1, 1], [], []>} : vector<16x128xbf16>, vector<128x96xbf16>, vector<16x96xf32> -> vector<16x96xf32>
    %c1_31 = arith.constant 1 : index
    %c0_32 = arith.constant 0 : index
    %153 = vector.load %arg6[%c1_31, %c0_32] : memref<2x96xf32, #tpu.memory_space<vmem>>, vector<1x96xf32>
    %154 = vector.broadcast %153 : vector<1x96xf32> to vector<16x96xf32>
    %155 = arith.addf %152, %154 : vector<16x96xf32>
    %156 = vector.extract_strided_slice %155 {offsets = [0, 0], sizes = [16, 32], strides = [1, 1]} : vector<16x96xf32> to vector<16x32xf32>
    %157 = vector.extract_strided_slice %155 {offsets = [0, 32], sizes = [16, 32], strides = [1, 1]} : vector<16x96xf32> to vector<16x32xf32>
    %158 = vector.extract_strided_slice %155 {offsets = [0, 64], sizes = [16, 32], strides = [1, 1]} : vector<16x96xf32> to vector<16x32xf32>
    %159 = vector.extract_strided_slice %1 {offsets = [0, 128], sizes = [32, 128], strides = [1, 1]} : vector<32x256xbf16> to vector<32x128xbf16>
    %c3 = arith.constant 3 : index
    %c0_33 = arith.constant 0 : index
    %160 = vector.load %arg7[%c3, %c0_33] : memref<16x128xf32, #tpu.memory_space<vmem>>, vector<1x128xf32>
    %161 = vector.extract_strided_slice %156 {offsets = [0, 0], sizes = [8, 32], strides = [1, 1]} : vector<16x32xf32> to vector<8x32xf32>
    %162 = vector.extract_strided_slice %161 {offsets = [0, 0], sizes = [8, 8], strides = [1, 1]} : vector<8x32xf32> to vector<8x8xf32>
    %163 = vector.shape_cast %162 : vector<8x8xf32> to vector<1x8x8xf32>
    %164 = vector.extract_strided_slice %161 {offsets = [0, 8], sizes = [8, 8], strides = [1, 1]} : vector<8x32xf32> to vector<8x8xf32>
    %165 = vector.shape_cast %164 : vector<8x8xf32> to vector<1x8x8xf32>
    %166 = vector.extract_strided_slice %161 {offsets = [0, 16], sizes = [8, 8], strides = [1, 1]} : vector<8x32xf32> to vector<8x8xf32>
    %167 = vector.shape_cast %166 : vector<8x8xf32> to vector<1x8x8xf32>
    %168 = vector.extract_strided_slice %161 {offsets = [0, 24], sizes = [8, 8], strides = [1, 1]} : vector<8x32xf32> to vector<8x8xf32>
    %169 = vector.shape_cast %168 : vector<8x8xf32> to vector<1x8x8xf32>
    %170 = vector.extract_strided_slice %156 {offsets = [8, 0], sizes = [8, 32], strides = [1, 1]} : vector<16x32xf32> to vector<8x32xf32>
    %171 = vector.extract_strided_slice %170 {offsets = [0, 0], sizes = [8, 8], strides = [1, 1]} : vector<8x32xf32> to vector<8x8xf32>
    %172 = vector.shape_cast %171 : vector<8x8xf32> to vector<1x8x8xf32>
    %173 = vector.extract_strided_slice %170 {offsets = [0, 8], sizes = [8, 8], strides = [1, 1]} : vector<8x32xf32> to vector<8x8xf32>
    %174 = vector.shape_cast %173 : vector<8x8xf32> to vector<1x8x8xf32>
    %175 = vector.extract_strided_slice %170 {offsets = [0, 16], sizes = [8, 8], strides = [1, 1]} : vector<8x32xf32> to vector<8x8xf32>
    %176 = vector.shape_cast %175 : vector<8x8xf32> to vector<1x8x8xf32>
    %177 = vector.extract_strided_slice %170 {offsets = [0, 24], sizes = [8, 8], strides = [1, 1]} : vector<8x32xf32> to vector<8x8xf32>
    %178 = vector.shape_cast %177 : vector<8x8xf32> to vector<1x8x8xf32>
    %179 = tpu.concatenate %163, %165, %167, %169, %172, %174, %176, %178 in 0 : vector<1x8x8xf32>, vector<1x8x8xf32>, vector<1x8x8xf32>, vector<1x8x8xf32>, vector<1x8x8xf32>, vector<1x8x8xf32>, vector<1x8x8xf32>, vector<1x8x8xf32> -> vector<8x8x8xf32>
    %180 = arith.truncf %179 : vector<8x8x8xf32> to vector<8x8x8xbf16>
    %181 = vector.extract_strided_slice %157 {offsets = [0, 0], sizes = [8, 32], strides = [1, 1]} : vector<16x32xf32> to vector<8x32xf32>
    %182 = vector.extract_strided_slice %181 {offsets = [0, 0], sizes = [8, 8], strides = [1, 1]} : vector<8x32xf32> to vector<8x8xf32>
    %183 = vector.shape_cast %182 : vector<8x8xf32> to vector<1x8x8xf32>
    %184 = vector.extract_strided_slice %181 {offsets = [0, 8], sizes = [8, 8], strides = [1, 1]} : vector<8x32xf32> to vector<8x8xf32>
    %185 = vector.shape_cast %184 : vector<8x8xf32> to vector<1x8x8xf32>
    %186 = vector.extract_strided_slice %181 {offsets = [0, 16], sizes = [8, 8], strides = [1, 1]} : vector<8x32xf32> to vector<8x8xf32>
    %187 = vector.shape_cast %186 : vector<8x8xf32> to vector<1x8x8xf32>
    %188 = vector.extract_strided_slice %181 {offsets = [0, 24], sizes = [8, 8], strides = [1, 1]} : vector<8x32xf32> to vector<8x8xf32>
    %189 = vector.shape_cast %188 : vector<8x8xf32> to vector<1x8x8xf32>
    %190 = vector.extract_strided_slice %157 {offsets = [8, 0], sizes = [8, 32], strides = [1, 1]} : vector<16x32xf32> to vector<8x32xf32>
    %191 = vector.extract_strided_slice %190 {offsets = [0, 0], sizes = [8, 8], strides = [1, 1]} : vector<8x32xf32> to vector<8x8xf32>
    %192 = vector.shape_cast %191 : vector<8x8xf32> to vector<1x8x8xf32>
    %193 = vector.extract_strided_slice %190 {offsets = [0, 8], sizes = [8, 8], strides = [1, 1]} : vector<8x32xf32> to vector<8x8xf32>
    %194 = vector.shape_cast %193 : vector<8x8xf32> to vector<1x8x8xf32>
    %195 = vector.extract_strided_slice %190 {offsets = [0, 16], sizes = [8, 8], strides = [1, 1]} : vector<8x32xf32> to vector<8x8xf32>
    %196 = vector.shape_cast %195 : vector<8x8xf32> to vector<1x8x8xf32>
    %197 = vector.extract_strided_slice %190 {offsets = [0, 24], sizes = [8, 8], strides = [1, 1]} : vector<8x32xf32> to vector<8x8xf32>
    %198 = vector.shape_cast %197 : vector<8x8xf32> to vector<1x8x8xf32>
    %199 = tpu.concatenate %183, %185, %187, %189, %192, %194, %196, %198 in 0 : vector<1x8x8xf32>, vector<1x8x8xf32>, vector<1x8x8xf32>, vector<1x8x8xf32>, vector<1x8x8xf32>, vector<1x8x8xf32>, vector<1x8x8xf32>, vector<1x8x8xf32> -> vector<8x8x8xf32>
    %200 = arith.truncf %199 : vector<8x8x8xf32> to vector<8x8x8xbf16>
    %201 = vector.extract_strided_slice %158 {offsets = [0, 0], sizes = [8, 32], strides = [1, 1]} : vector<16x32xf32> to vector<8x32xf32>
    %202 = vector.extract_strided_slice %201 {offsets = [0, 0], sizes = [8, 8], strides = [1, 1]} : vector<8x32xf32> to vector<8x8xf32>
    %203 = vector.shape_cast %202 : vector<8x8xf32> to vector<1x8x8xf32>
    %204 = vector.extract_strided_slice %201 {offsets = [0, 8], sizes = [8, 8], strides = [1, 1]} : vector<8x32xf32> to vector<8x8xf32>
    %205 = vector.shape_cast %204 : vector<8x8xf32> to vector<1x8x8xf32>
    %206 = vector.extract_strided_slice %201 {offsets = [0, 16], sizes = [8, 8], strides = [1, 1]} : vector<8x32xf32> to vector<8x8xf32>
    %207 = vector.shape_cast %206 : vector<8x8xf32> to vector<1x8x8xf32>
    %208 = vector.extract_strided_slice %201 {offsets = [0, 24], sizes = [8, 8], strides = [1, 1]} : vector<8x32xf32> to vector<8x8xf32>
    %209 = vector.shape_cast %208 : vector<8x8xf32> to vector<1x8x8xf32>
    %210 = vector.extract_strided_slice %158 {offsets = [8, 0], sizes = [8, 32], strides = [1, 1]} : vector<16x32xf32> to vector<8x32xf32>
    %211 = vector.extract_strided_slice %210 {offsets = [0, 0], sizes = [8, 8], strides = [1, 1]} : vector<8x32xf32> to vector<8x8xf32>
    %212 = vector.shape_cast %211 : vector<8x8xf32> to vector<1x8x8xf32>
    %213 = vector.extract_strided_slice %210 {offsets = [0, 8], sizes = [8, 8], strides = [1, 1]} : vector<8x32xf32> to vector<8x8xf32>
    %214 = vector.shape_cast %213 : vector<8x8xf32> to vector<1x8x8xf32>
    %215 = vector.extract_strided_slice %210 {offsets = [0, 16], sizes = [8, 8], strides = [1, 1]} : vector<8x32xf32> to vector<8x8xf32>
    %216 = vector.shape_cast %215 : vector<8x8xf32> to vector<1x8x8xf32>
    %217 = vector.extract_strided_slice %210 {offsets = [0, 24], sizes = [8, 8], strides = [1, 1]} : vector<8x32xf32> to vector<8x8xf32>
    %218 = vector.shape_cast %217 : vector<8x8xf32> to vector<1x8x8xf32>
    %219 = tpu.concatenate %203, %205, %207, %209, %212, %214, %216, %218 in 0 : vector<1x8x8xf32>, vector<1x8x8xf32>, vector<1x8x8xf32>, vector<1x8x8xf32>, vector<1x8x8xf32>, vector<1x8x8xf32>, vector<1x8x8xf32>, vector<1x8x8xf32> -> vector<8x8x8xf32>
    %220 = arith.truncf %219 : vector<8x8x8xf32> to vector<8x8x8xbf16>
    %cst_34 = arith.constant dense<0.000000e+00> : vector<8x8x8xf32>
    %221 = tpu.matmul %180, %200, %cst_34 {dimension_numbers = #tpu.dot_dimension_numbers<[2], [2], [1], [1], [0, 0, 0, 1, 1, 1], [0], [0]>} : vector<8x8x8xbf16>, vector<8x8x8xbf16>, vector<8x8x8xf32> -> vector<8x8x8xf32>
    %cst_35 = arith.constant 0.353553385 : f32
    %222 = vector.broadcast %cst_35 : f32 to vector<8x8x8xf32>
    %223 = arith.mulf %221, %222 : vector<8x8x8xf32>
    %cst_36 = arith.constant dense<0xFF800000> : vector<8x8xf32>
    %224 = vector.multi_reduction <maximumf>, %223, %cst_36 [2] : vector<8x8x8xf32> to vector<8x8xf32>
    %225 = vector.shape_cast %224 : vector<8x8xf32> to vector<8x8x1xf32>
    %226 = vector.broadcast %225 : vector<8x8x1xf32> to vector<8x8x8xf32>
    %227 = arith.subf %223, %226 : vector<8x8x8xf32>
    %228 = math.exp %227 : vector<8x8x8xf32>
    %cst_37 = arith.constant dense<0.000000e+00> : vector<8x8xf32>
    %229 = vector.multi_reduction <add>, %228, %cst_37 [2] : vector<8x8x8xf32> to vector<8x8xf32>
    %230 = vector.shape_cast %229 : vector<8x8xf32> to vector<8x8x1xf32>
    %231 = tpu.reciprocal %230 {approx = true} : vector<8x8x1xf32> -> vector<8x8x1xf32>
    %232 = vector.broadcast %231 : vector<8x8x1xf32> to vector<8x8x8xf32>
    %233 = arith.mulf %228, %232 : vector<8x8x8xf32>
    %234 = arith.truncf %233 : vector<8x8x8xf32> to vector<8x8x8xbf16>
    %cst_38 = arith.constant dense<0.000000e+00> : vector<8x8x8xf32>
    %235 = tpu.matmul %234, %220, %cst_38 {dimension_numbers = #tpu.dot_dimension_numbers<[2], [1], [1], [2], [0, 0, 0, 1, 1, 2], [0], [0]>} : vector<8x8x8xbf16>, vector<8x8x8xbf16>, vector<8x8x8xf32> -> vector<8x8x8xf32>
    %236 = vector.extract_strided_slice %235 {offsets = [0, 0, 0], sizes = [1, 8, 8], strides = [1, 1, 1]} : vector<8x8x8xf32> to vector<1x8x8xf32>
    %237 = vector.shape_cast %236 : vector<1x8x8xf32> to vector<8x8xf32>
    %238 = vector.extract_strided_slice %235 {offsets = [4, 0, 0], sizes = [1, 8, 8], strides = [1, 1, 1]} : vector<8x8x8xf32> to vector<1x8x8xf32>
    %239 = vector.shape_cast %238 : vector<1x8x8xf32> to vector<8x8xf32>
    %240 = tpu.concatenate %237, %239 in 0 : vector<8x8xf32>, vector<8x8xf32> -> vector<16x8xf32>
    %241 = vector.extract_strided_slice %235 {offsets = [1, 0, 0], sizes = [1, 8, 8], strides = [1, 1, 1]} : vector<8x8x8xf32> to vector<1x8x8xf32>
    %242 = vector.shape_cast %241 : vector<1x8x8xf32> to vector<8x8xf32>
    %243 = vector.extract_strided_slice %235 {offsets = [5, 0, 0], sizes = [1, 8, 8], strides = [1, 1, 1]} : vector<8x8x8xf32> to vector<1x8x8xf32>
    %244 = vector.shape_cast %243 : vector<1x8x8xf32> to vector<8x8xf32>
    %245 = tpu.concatenate %242, %244 in 0 : vector<8x8xf32>, vector<8x8xf32> -> vector<16x8xf32>
    %246 = vector.extract_strided_slice %235 {offsets = [2, 0, 0], sizes = [1, 8, 8], strides = [1, 1, 1]} : vector<8x8x8xf32> to vector<1x8x8xf32>
    %247 = vector.shape_cast %246 : vector<1x8x8xf32> to vector<8x8xf32>
    %248 = vector.extract_strided_slice %235 {offsets = [6, 0, 0], sizes = [1, 8, 8], strides = [1, 1, 1]} : vector<8x8x8xf32> to vector<1x8x8xf32>
    %249 = vector.shape_cast %248 : vector<1x8x8xf32> to vector<8x8xf32>
    %250 = tpu.concatenate %247, %249 in 0 : vector<8x8xf32>, vector<8x8xf32> -> vector<16x8xf32>
    %251 = vector.extract_strided_slice %235 {offsets = [3, 0, 0], sizes = [1, 8, 8], strides = [1, 1, 1]} : vector<8x8x8xf32> to vector<1x8x8xf32>
    %252 = vector.shape_cast %251 : vector<1x8x8xf32> to vector<8x8xf32>
    %253 = vector.extract_strided_slice %235 {offsets = [7, 0, 0], sizes = [1, 8, 8], strides = [1, 1, 1]} : vector<8x8x8xf32> to vector<1x8x8xf32>
    %254 = vector.shape_cast %253 : vector<1x8x8xf32> to vector<8x8xf32>
    %255 = tpu.concatenate %252, %254 in 0 : vector<8x8xf32>, vector<8x8xf32> -> vector<16x8xf32>
    %256 = tpu.concatenate %240, %245, %250, %255 in 1 : vector<16x8xf32>, vector<16x8xf32>, vector<16x8xf32>, vector<16x8xf32> -> vector<16x32xf32>
    %257 = arith.truncf %256 : vector<16x32xf32> to vector<16x32xbf16>
    %cst_39 = arith.constant dense<0.000000e+00> : vector<16x128xf32>
    %258 = tpu.matmul %257, %159, %cst_39 {dimension_numbers = #tpu.dot_dimension_numbers<[1], [0], [0], [1], [0, 0, 1, 1], [], []>} : vector<16x32xbf16>, vector<32x128xbf16>, vector<16x128xf32> -> vector<16x128xf32>
    %259 = vector.broadcast %160 : vector<1x128xf32> to vector<16x128xf32>
    %260 = arith.addf %258, %259 : vector<16x128xf32>
    %261 = arith.addf %149, %260 : vector<16x128xf32>
    %c4 = arith.constant 4 : index
    %c0_40 = arith.constant 0 : index
    %262 = vector.load %arg7[%c4, %c0_40] : memref<16x128xf32, #tpu.memory_space<vmem>>, vector<1x128xf32>
    %c5 = arith.constant 5 : index
    %c0_41 = arith.constant 0 : index
    %263 = vector.load %arg7[%c5, %c0_41] : memref<16x128xf32, #tpu.memory_space<vmem>>, vector<1x128xf32>
    %cst_42 = arith.constant dense<0.000000e+00> : vector<16xf32>
    %264 = vector.multi_reduction <add>, %261, %cst_42 [1] : vector<16x128xf32> to vector<16xf32>
    %265 = vector.shape_cast %264 : vector<16xf32> to vector<16x1xf32>
    %cst_43 = arith.constant 3.125000e-02 : f32
    %266 = vector.broadcast %cst_43 : f32 to vector<16x1xf32>
    %267 = arith.mulf %265, %266 : vector<16x1xf32>
    %268 = arith.mulf %261, %261 : vector<16x128xf32>
    %cst_44 = arith.constant dense<0.000000e+00> : vector<16xf32>
    %269 = vector.multi_reduction <add>, %268, %cst_44 [1] : vector<16x128xf32> to vector<16xf32>
    %270 = vector.shape_cast %269 : vector<16xf32> to vector<16x1xf32>
    %cst_45 = arith.constant 3.125000e-02 : f32
    %271 = vector.broadcast %cst_45 : f32 to vector<16x1xf32>
    %272 = arith.mulf %270, %271 : vector<16x1xf32>
    %273 = arith.mulf %267, %267 : vector<16x1xf32>
    %274 = arith.subf %272, %273 : vector<16x1xf32>
    %275 = vector.broadcast %267 : vector<16x1xf32> to vector<16x128xf32>
    %276 = arith.subf %261, %275 : vector<16x128xf32>
    %cst_46 = arith.constant 9.99999974E-6 : f32
    %277 = vector.broadcast %cst_46 : f32 to vector<16x1xf32>
    %278 = arith.addf %274, %277 : vector<16x1xf32>
    %279 = math.rsqrt %278 : vector<16x1xf32>
    %280 = vector.broadcast %279 : vector<16x1xf32> to vector<16x128xf32>
    %281 = arith.mulf %276, %280 : vector<16x128xf32>
    %282 = vector.broadcast %262 : vector<1x128xf32> to vector<16x128xf32>
    %283 = arith.mulf %281, %282 : vector<16x128xf32>
    %284 = vector.broadcast %263 : vector<1x128xf32> to vector<16x128xf32>
    %285 = arith.addf %283, %284 : vector<16x128xf32>
    %286 = arith.truncf %285 : vector<16x128xf32> to vector<16x128xbf16>
    %c0_47 = arith.constant 0 : index
    %c0_48 = arith.constant 0 : index
    %287 = vector.load %arg5[%c0_47, %c0_48] : memref<256x128xbf16, #tpu.memory_space<vmem>>, vector<128x128xbf16>
    %cst_49 = arith.constant dense<0.000000e+00> : vector<16x128xf32>
    %288 = tpu.matmul %286, %287, %cst_49 {dimension_numbers = #tpu.dot_dimension_numbers<[1], [0], [0], [1], [0, 0, 1, 1], [], []>} : vector<16x128xbf16>, vector<128x128xbf16>, vector<16x128xf32> -> vector<16x128xf32>
    %c6 = arith.constant 6 : index
    %c0_50 = arith.constant 0 : index
    %289 = vector.load %arg7[%c6, %c0_50] : memref<16x128xf32, #tpu.memory_space<vmem>>, vector<1x128xf32>
    %290 = vector.broadcast %289 : vector<1x128xf32> to vector<16x128xf32>
    %291 = arith.addf %288, %290 : vector<16x128xf32>
    %cst_51 = arith.constant 0.000000e+00 : f32
    %292 = vector.broadcast %cst_51 : f32 to vector<16x128xf32>
    %293 = arith.maximumf %291, %292 : vector<16x128xf32>
    %294 = arith.truncf %293 : vector<16x128xf32> to vector<16x128xbf16>
    %c128 = arith.constant 128 : index
    %c0_52 = arith.constant 0 : index
    %295 = vector.load %arg5[%c128, %c0_52] : memref<256x128xbf16, #tpu.memory_space<vmem>>, vector<128x128xbf16>
    %cst_53 = arith.constant dense<0.000000e+00> : vector<16x128xf32>
    %296 = tpu.matmul %294, %295, %cst_53 {dimension_numbers = #tpu.dot_dimension_numbers<[1], [0], [0], [1], [0, 0, 1, 1], [], []>} : vector<16x128xbf16>, vector<128x128xbf16>, vector<16x128xf32> -> vector<16x128xf32>
    %c7 = arith.constant 7 : index
    %c0_54 = arith.constant 0 : index
    %297 = vector.load %arg7[%c7, %c0_54] : memref<16x128xf32, #tpu.memory_space<vmem>>, vector<1x128xf32>
    %298 = vector.broadcast %297 : vector<1x128xf32> to vector<16x128xf32>
    %299 = arith.addf %296, %298 : vector<16x128xf32>
    %300 = arith.addf %285, %299 : vector<16x128xf32>
    %c8 = arith.constant 8 : index
    %c0_55 = arith.constant 0 : index
    %301 = vector.load %arg7[%c8, %c0_55] : memref<16x128xf32, #tpu.memory_space<vmem>>, vector<1x128xf32>
    %c9 = arith.constant 9 : index
    %c0_56 = arith.constant 0 : index
    %302 = vector.load %arg7[%c9, %c0_56] : memref<16x128xf32, #tpu.memory_space<vmem>>, vector<1x128xf32>
    %cst_57 = arith.constant dense<0.000000e+00> : vector<16xf32>
    %303 = vector.multi_reduction <add>, %300, %cst_57 [1] : vector<16x128xf32> to vector<16xf32>
    %304 = vector.shape_cast %303 : vector<16xf32> to vector<16x1xf32>
    %cst_58 = arith.constant 3.125000e-02 : f32
    %305 = vector.broadcast %cst_58 : f32 to vector<16x1xf32>
    %306 = arith.mulf %304, %305 : vector<16x1xf32>
    %307 = arith.mulf %300, %300 : vector<16x128xf32>
    %cst_59 = arith.constant dense<0.000000e+00> : vector<16xf32>
    %308 = vector.multi_reduction <add>, %307, %cst_59 [1] : vector<16x128xf32> to vector<16xf32>
    %309 = vector.shape_cast %308 : vector<16xf32> to vector<16x1xf32>
    %cst_60 = arith.constant 3.125000e-02 : f32
    %310 = vector.broadcast %cst_60 : f32 to vector<16x1xf32>
    %311 = arith.mulf %309, %310 : vector<16x1xf32>
    %312 = arith.mulf %306, %306 : vector<16x1xf32>
    %313 = arith.subf %311, %312 : vector<16x1xf32>
    %314 = vector.broadcast %306 : vector<16x1xf32> to vector<16x128xf32>
    %315 = arith.subf %300, %314 : vector<16x128xf32>
    %cst_61 = arith.constant 9.99999974E-6 : f32
    %316 = vector.broadcast %cst_61 : f32 to vector<16x1xf32>
    %317 = arith.addf %313, %316 : vector<16x1xf32>
    %318 = math.rsqrt %317 : vector<16x1xf32>
    %319 = vector.broadcast %318 : vector<16x1xf32> to vector<16x128xf32>
    %320 = arith.mulf %315, %319 : vector<16x128xf32>
    %321 = vector.broadcast %301 : vector<1x128xf32> to vector<16x128xf32>
    %322 = arith.mulf %320, %321 : vector<16x128xf32>
    %323 = vector.broadcast %302 : vector<1x128xf32> to vector<16x128xf32>
    %324 = arith.addf %322, %323 : vector<16x128xf32>
    %c0_62 = arith.constant 0 : index
    %c0_63 = arith.constant 0 : index
    %325 = vector.load %arg8[%c0_62, %c0_63] : memref<16x128xf32, #tpu.memory_space<vmem>>, vector<16x128xf32>
    tpu.vector_store %arg8[%c0_62, %c0_63], %324 {strides = array<i32>} : memref<16x128xf32, #tpu.memory_space<vmem>>, vector<16x128xf32>,
    return
  }
}

</mosaic_0001>

<bundles_post_ra>
// kernel: _forward.1
= control target key start
LH: loop header
LB: loop body
LE: loop exit
PB: predicated region body
PF: predicated region fallthrough
CT: control target
= control target key end

     0   :  { %v3483_v1 = vmov 0.0   ;;  %s3484_s9 = smov 96   ;;  %vm3485_vm0 = vmmov 0   ;;  %s3486_s24 = smov 64   ;;  %vm375_vm1 = vcmask 64512   ;;  %vm851_vm2 = vcmask 1043456   ;;  %s4286_s3 = inlined_call_operand.vmem [shape: bf16[128,192], index: 3, kind: input, shape index: {}]   ;;  %s4287_s6 = inlined_call_operand.vmem [shape: f32[2,96], index: 6, kind: input, shape index: {}]   ;;  %s4288_s0 = inlined_call_operand.vmem [shape: f32[16,128], index: 0, kind: input, shape index: {}]   ;;  %s4289_s1 = inlined_call_operand.vmem [shape: f32[16,128], index: 1, kind: input, shape index: {}]   ;;  %s4290_s2 = inlined_call_operand.vmem [shape: f32[16,128], index: 2, kind: input, shape index: {}]   ;;  %s4291_s4 = inlined_call_operand.vmem [shape: bf16[32,256], index: 4, kind: input, shape index: {}]   ;;  %s4292_s7 = inlined_call_operand.vmem [shape: f32[16,128], index: 7, kind: input, shape index: {}]   ;;  %s4293_s5 = inlined_call_operand.vmem [shape: bf16[256,128], index: 5, kind: input, shape index: {}]   ;;  %s4294_s8 = inlined_call_operand.vmem [shape: f32[16,128], index: 8, kind: output, shape index: {}]  }
   0x1   :  { %v3542_v0 = vld [vmem:[%s4286_s3] ss:$8 sps:$4 sm:$0xff]   ;;  %2989 = vmatprep.subr.bf16.mxu0 %v3483_v1  ;;  %3009 = vmatprep.subr.bf16.mxu1 %v3483_v1  ;;  %v3549_v2 = vld [vmem:[%s4286_s3 + $0x10] ss:$8 sps:$4 sm:$0xff]   ;;  %s3487_s12 = smov 120   ;;  %s3489_s13 = smov 104  }
   0x2   :  { %153 = vrot.lane.b32.xlu0 %v3542_v0, %s3484_s9  ;;  %v3556_v3 = vld [vmem:[%s4286_s3 + $0x20] ss:$8 sps:$4 sm:$0xff]   ;;  %2990 = vmatpush3.bf16.msra.mxu0 %v3542_v0  ;;  %v3567_v4 = vld [vmem:[%s4286_s3 + $0x30] ss:$8 sps:$4 sm:$0xff]   ;;  %s3490_s19 = smov 8   ;;  %s3491_s20 = smov 16  }
   0x3   :  { %2991 = vmatprep.subr.bf16.mxu0 %v3483_v1  ;;  %3005 = vmatprep.mubr.msk.bf16.mxu0 %vm3485_vm0, %v3483_v1  ;;  %v3576_v5 = vld [vmem:[%s4286_s3 + $0x40] ss:$8 sps:$4 sm:$0xff]   ;;  %v3585_v6 = vld [vmem:[%s4286_s3 + $0x50] ss:$8 sps:$4 sm:$0xff]   ;;  %s3492_s26 = smov 32   ;;  %s3493_s10 = smov 24  }
   0x4   :  { %157 = vrot.lane.b32.xlu1 %v3556_v3, %s3484_s9  ;;  %3025 = vmatprep.mubr.msk.bf16.mxu1 %vm3485_vm0, %v3483_v1  ;;  %v3592_v7 = vld [vmem:[%s4286_s3 + $0x60] ss:$8 sps:$4 sm:$0xff]   ;;  %v3601_v8 = vld [vmem:[%s4286_s3 + $0x70] ss:$8 sps:$4 sm:$0xff]   ;;  %vm1243_vm3 = vcmask 130048   ;;  %vm1246_vm4 = vcmask 195584  }
   0x5   :  { %v3614_v9 = vld [vmem:[%s4287_s6] ss:$0 sm:$0xff]  ;;  %v51_v11 = vld [vmem:[%s4288_s0 + $0x8] sm:$0xff]  ;;  %vm1266_vm5 = vcmask 261120  }
   0x6   :  { %155 = vrot.lane.b32.xlu0 %v3549_v2, %s3484_s9  ;;  %2992 = vmatpush3.bf16.msra.mxu0 %v3549_v2  ;;  %v50_v10 = vld [vmem:[%s4288_s0] sm:$0xff]  ;;  %v53_v21 = vld [vmem:[%s4289_s1 + $0x8] sm:$0xff] }
   0x7   :  { %2993 = vmatprep.subr.bf16.mxu0 %v3483_v1  ;;  %v56_v12 = vpack.c.bf16 %v51_v11, %v50_v10  ;;  %v52_v20 = vld [vmem:[%s4289_s1] sm:$0xff]  ;;  %s3488_s1 = smov 112   ;;  %v55_v57 = vld [vmem:[%s4290_s2 + $0x8] sm:$0xff] }
   0x8   :  { %159 = vrot.lane.b32.xlu1 %v3567_v4, %s3484_s9  ;;  %v57_v23 = vpack.c.bf16 %v53_v21, %v52_v20  ;;  %v54_v56 = vld [vmem:[%s4290_s2] sm:$0xff] }
   0x9   :  { %v58_v60 = vpack.c.bf16 %v55_v57, %v54_v56 }
   0xa   :  { %161 = vrot.lane.b32.xlu0 %v3576_v5, %s3484_s9  ;;  %2994 = vmatpush3.bf16.msra.mxu0 %v3556_v3 }
   0xb   :  { %2995 = vmatprep.subr.bf16.mxu0 %v3483_v1 }
   0xc   :  { %163 = vrot.lane.b32.xlu1 %v3585_v6, %s3484_s9 }
   0xe   :  { %165 = vrot.lane.b32.xlu0 %v3592_v7, %s3484_s9  ;;  %2996 = vmatpush3.bf16.msra.mxu0 %v3567_v4 }
   0xf   :  { %2997 = vmatprep.subr.bf16.mxu0 %v3483_v1 }
  0x10   :  { %167 = vrot.lane.b32.xlu1 %v3601_v8, %s3484_s9 }
  0x12   :  { %2998 = vmatpush3.bf16.msra.mxu0 %v3576_v5  ;;  %178 = vrot.lane.b32.xlu0 %v3614_v9, %s3484_s9 }
  0x13   :  { %2999 = vmatprep.subr.bf16.mxu0 %v3483_v1 }
  0x14   :  { %222 = vrot.lane.b32.xlu1 %v3542_v0, %s3486_s24 }
  0x16   :  { %3000 = vmatpush3.bf16.msra.mxu0 %v3585_v6  ;;  %224 = vrot.lane.b32.xlu0 %v3549_v2, %s3486_s24 }
  0x17   :  { %3001 = vmatprep.subr.bf16.mxu0 %v3483_v1 }
  0x18   :  { %226 = vrot.lane.b32.xlu1 %v3556_v3, %s3486_s24 }
  0x1a   :  { %3002 = vmatpush3.bf16.msra.mxu0 %v3592_v7 }
  0x1b   :  { %3003 = vmatprep.subr.bf16.mxu0 %v3483_v1 }
  0x1c   :  { %228 = vrot.lane.b32.xlu1 %v3567_v4, %s3486_s24 }
  0x1e   :  { %3004 = vmatpush3.bf16.msra.mxu0 %v3601_v8 }
  0x1f   :  { %3029 = vmatprep.subr.bf16.mxu0 %v3483_v1 }
  0x21   :  { %3006 = vmatmul.mubr.bf16.vlgmr.msra.gmra.mrb[0].mxu0 %v56_v12 }
  0x22   :  { %3045 = vmatprep.mubr.msk.bf16.mxu0 %vm3485_vm0, %v3483_v1 }
  0x74   :  { %v154_v13 = vpop.permute.xlu0 %153 }
  0x75   :  { %3010 = vmatpush3.bf16.msra.mxu1 %v154_v13 }
  0x76   :  { %3011 = vmatprep.subr.bf16.mxu1 %v3483_v1  ;;  %v158_v15 = vpop.permute.xlu1 %157 }
  0x78   :  { %v156_v14 = vpop.permute.xlu0 %155 }
  0x79   :  { %3012 = vmatpush3.bf16.msra.mxu1 %v156_v14 }
  0x7a   :  { %3013 = vmatprep.subr.bf16.mxu1 %v3483_v1  ;;  %v160_v16 = vpop.permute.xlu1 %159 }
  0x7c   :  { %v162_v17 = vpop.permute.xlu0 %161 }
  0x7d   :  { %3014 = vmatpush3.bf16.msra.mxu1 %v158_v15 }
  0x7e   :  { %3015 = vmatprep.subr.bf16.mxu1 %v3483_v1  ;;  %v164_v18 = vpop.permute.xlu1 %163 }
  0x80   :  { %v166_v19 = vpop.permute.xlu0 %165 }
  0x81   :  { %3016 = vmatpush3.bf16.msra.mxu1 %v160_v16 }
  0x82   :  { %3017 = vmatprep.subr.bf16.mxu1 %v3483_v1  ;;  %v168_v22 = vpop.permute.xlu1 %167 }
  0x84   :  { %v179_v29 = vpop.permute.xlu0 %178 }
  0x85   :  { %3018 = vmatpush3.bf16.msra.mxu1 %v162_v17 }
  0x86   :  { %3019 = vmatprep.subr.bf16.mxu1 %v3483_v1  ;;  %v223_v30 = vpop.permute.xlu1 %222 }
  0x87   :  { %3030 = vmatpush3.bf16.msra.mxu0 %v223_v30 }
  0x88   :  { %v225_v31 = vpop.permute.xlu0 %224  ;;  %3031 = vmatprep.subr.bf16.mxu0 %v3483_v1 }
  0x89   :  { %3020 = vmatpush3.bf16.msra.mxu1 %v164_v18 }
  0x8a   :  { %3021 = vmatprep.subr.bf16.mxu1 %v3483_v1  ;;  %v227_v32 = vpop.permute.xlu1 %226 }
  0x8b   :  { %3032 = vmatpush3.bf16.msra.mxu0 %v225_v31 }
  0x8c   :  { %3033 = vmatprep.subr.bf16.mxu0 %v3483_v1 }
  0x8d   :  { %3022 = vmatpush3.bf16.msra.mxu1 %v166_v19 }
  0x8e   :  { %3023 = vmatprep.subr.bf16.mxu1 %v3483_v1  ;;  %v229_v33 = vpop.permute.xlu1 %228 }
  0x8f   :  { %3034 = vmatpush3.bf16.msra.mxu0 %v227_v32 }
  0x90   :  { %3035 = vmatprep.subr.bf16.mxu0 %v3483_v1 }
  0x91   :  { %3024 = vmatpush3.bf16.msra.mxu1 %v168_v22 }
  0x92   :  { %3049 = vmatprep.subr.bf16.mxu1 %v3483_v1 }
  0x93   :  { %3036 = vmatpush3.bf16.msra.mxu0 %v229_v33 }
  0x94   :  { %3026 = vmatmul.mubr.bf16.vlgmr.msra.gmra.mrb[0].mxu1 %v57_v23  ;;  %3037 = vmatprep.subr.bf16.mxu0 %v3483_v1 }
  0x95   :  { %3051 = vmatprep.mubr.msk.bf16.mxu1 %vm3485_vm0, %v3483_v1 }
  0xf4   :  { %v146_v24 = vpop.f32.mrb[0].mxu0 }
  0xf5   :  { %v147_v25 = vadd.f32 %v3614_v9, %v146_v24  ;;  %v3007_v26 = vpop.f32.mrb[1].mxu0 }
  0xf6   :  { %v149_v27 = vpop.f32.mrb[2].mxu0 }
  0xf7   :  { %292 = vrot.lane.b32.xlu1 %v147_v25, %s3487_s12  ;;  %v3008_v28 = vpop.f32.mrb[3].mxu0  ;;  %v3674_v42 = vadd.f32 %v3614_v9, %v149_v27  ;;  %v311_v43 = vpack.c.bf16 %v147_v25, %v147_v25 }
  0xf9   :  { %v315_v20 = vpack.c.bf16 %v3674_v42, %v3674_v42 }
  0xfb   :  { %232 = vrot.lane.b32.xlu1 %v3585_v6, %s3486_s24 }
  0xff   :  { %295 = vrot.lane.b32.xlu1 %v147_v25, %s3488_s1 }
 0x103   :  { %236 = vrot.lane.b32.xlu1 %v3601_v8, %s3486_s24 }
 0x167   :  { %v215_v34 = vpop.f32.mrb[0].mxu1 }
 0x168   :  { %v216_v35 = vadd.f32 %v215_v34, %v179_v29  ;;  %v3027_v36 = vpop.f32.mrb[1].mxu1 }
 0x169   :  { %v218_v37 = vpop.f32.mrb[2].mxu1  ;;  %v293_v44 = vpop.permute.xlu1 %292 }
 0x16a   :  { %v3667_v38 = vadd.f32 %v218_v37, %v179_v29  ;;  %320 = vrot.lane.b32.xlu0 %v216_v35, %s3487_s12  ;;  %v3028_v39 = vpop.f32.mrb[3].mxu1  ;;  %v339_v40 = vpack.c.bf16 %v216_v35, %v216_v35  ;;  %v312_v52 = vpack.c.bf16 %v293_v44, %v293_v44 }
 0x16c   :  { %330 = vrot.lane.b32.xlu1 %v3667_v38, %s3487_s12  ;;  %v380_v41 = vsel %vm375_vm1, %v339_v40, 0  ;;  %v343_v11 = vpack.c.bf16 %v3667_v38, %v3667_v38 }
 0x16d   :  { %3050 = vmatpush3.bf16.xpose.msra.mxu1 %v380_v41  ;;  %v233_v47 = vpop.permute.xlu1 %232 }
 0x16e   :  { %230 = vrot.lane.b32.xlu0 %v3576_v5, %s3486_s24  ;;  %3055 = vmatprep.subr.bf16.mxu1 %v3483_v1  ;;  %v564_v15 = vsel %vm375_vm1, %v343_v11, 0 }
 0x170   :  { %302 = vrot.lane.b32.xlu1 %v3674_v42, %s3487_s12 }
 0x171   :  { %v296_v50 = vpop.permute.xlu1 %295 }
 0x172   :  { %323 = vrot.lane.b32.xlu0 %v216_v35, %s3488_s1  ;;  %v313_v61 = vpack.c.bf16 %v296_v50, %v296_v50 }
 0x174   :  { %3052 = vmatmul.mubr.msk.bf16.vlgmr.msra.gmra.mrb[4].mxu1 %vm375_vm1, %v311_v43  ;;  %305 = vrot.lane.b32.xlu1 %v3674_v42, %s3488_s1 }
 0x175   :  { %3057 = vmatprep.mubr.msk.bf16.mxu1 %vm3485_vm0, %v3483_v1  ;;  %v237_v58 = vpop.permute.xlu1 %236 }
 0x176   :  { %234 = vrot.lane.b32.xlu0 %v3592_v7, %s3486_s24 }
 0x17a   :  { %326 = vrot.lane.b32.xlu0 %v216_v35, %s3489_s13 }
 0x17e   :  { %298 = vrot.lane.b32.xlu0 %v147_v25, %s3489_s13 }
 0x182   :  { %333 = vrot.lane.b32.xlu0 %v3667_v38, %s3488_s1 }
 0x186   :  { %336 = vrot.lane.b32.xlu0 %v3667_v38, %s3489_s13 }
 0x18a   :  { %308 = vrot.lane.b32.xlu0 %v3674_v42, %s3489_s13 }
 0x1dc   :  { %v321_v45 = vpop.permute.xlu0 %320 }
 0x1dd   :  { %v340_v46 = vpack.c.bf16 %v321_v45, %v321_v45 }
 0x1de   :  { %v331_v8 = vpop.permute.xlu1 %330 }
 0x1df   :  { %v426_v48 = vsel %vm375_vm1, %v340_v46, 0  ;;  %v344_v12 = vpack.c.bf16 %v331_v8, %v331_v8 }
 0x1e0   :  { %v231_v49 = vpop.permute.xlu0 %230  ;;  %3056 = vmatpush3.bf16.xpose.msra.mxu1 %v426_v48 }
 0x1e1   :  { %3038 = vmatpush3.bf16.msra.mxu0 %v231_v49  ;;  %3061 = vmatprep.subr.bf16.mxu1 %v3483_v1  ;;  %v610_v16 = vsel %vm375_vm1, %v344_v12, 0 }
 0x1e2   :  { %3039 = vmatprep.subr.bf16.mxu0 %v3483_v1  ;;  %v303_v19 = vpop.permute.xlu1 %302 }
 0x1e3   :  { %v316_v22 = vpack.c.bf16 %v303_v19, %v303_v19 }
 0x1e4   :  { %v324_v51 = vpop.permute.xlu0 %323 }
 0x1e5   :  { %v341_v53 = vpack.c.bf16 %v324_v51, %v324_v51  ;;  %3040 = vmatpush3.bf16.msra.mxu0 %v233_v47 }
 0x1e6   :  { %3041 = vmatprep.subr.bf16.mxu0 %v3483_v1  ;;  %v306_v25 = vpop.permute.xlu1 %305 }
 0x1e7   :  { %v472_v54 = vsel %vm375_vm1, %v341_v53, 0  ;;  %3058 = vmatmul.mubr.msk.bf16.vlgmr.msra.gmra.mrb[8].mxu1 %vm375_vm1, %v312_v52  ;;  %v317_v27 = vpack.c.bf16 %v306_v25, %v306_v25 }
 0x1e8   :  { %v235_v55 = vpop.permute.xlu0 %234  ;;  %3062 = vmatpush3.bf16.xpose.msra.mxu1 %v472_v54  ;;  %3063 = vmatprep.mubr.msk.bf16.mxu1 %vm3485_vm0, %v3483_v1 }
 0x1e9   :  { %3042 = vmatpush3.bf16.msra.mxu0 %v235_v55  ;;  %3067 = vmatprep.subr.bf16.mxu1 %v3483_v1 }
 0x1ea   :  { %3043 = vmatprep.subr.bf16.mxu0 %v3483_v1 }
 0x1ec   :  { %v327_v59 = vpop.permute.xlu0 %326 }
 0x1ed   :  { %v342_v62 = vpack.c.bf16 %v327_v59, %v327_v59  ;;  %3044 = vmatpush3.bf16.msra.mxu0 %v237_v58 }
 0x1ee   :  { %3073 = vmatprep.subr.bf16.mxu0 %v3483_v1 }
 0x1ef   :  { %v518_v63 = vsel %vm375_vm1, %v342_v62, 0  ;;  %3064 = vmatmul.mubr.msk.bf16.vlgmr.msra.gmra.mrb[12].mxu1 %vm375_vm1, %v313_v61 }
 0x1f0   :  { %v299_v10 = vpop.permute.xlu0 %298  ;;  %3068 = vmatpush3.bf16.xpose.msra.mxu1 %v518_v63  ;;  %3046 = vmatmul.mubr.bf16.vlgmr.msra.gmra.mrb[4].mxu0 %v58_v60 }
 0x1f1   :  { %3069 = vmatprep.mubr.msk.bf16.mxu1 %vm3485_vm0, %v3483_v1  ;;  %3079 = vmatprep.subr.bf16.mxu1 %v3483_v1  ;;  %v314_v14 = vpack.c.bf16 %v299_v10, %v299_v10 }
 0x1f2   :  { %3075 = vmatprep.mubr.msk.bf16.mxu0 %vm3485_vm0, %v3483_v1 }
 0x1f4   :  { %v334_v13 = vpop.permute.xlu0 %333 }
 0x1f5   :  { %v345_v18 = vpack.c.bf16 %v334_v13, %v334_v13 }
 0x1f6   :  { %3074 = vmatpush3.bf16.xpose.msra.mxu0 %v564_v15 }
 0x1f7   :  { %3070 = vmatmul.mubr.msk.bf16.vlgmr.msra.gmra.mrb[16].mxu1 %vm375_vm1, %v314_v14  ;;  %3085 = vmatprep.subr.bf16.mxu0 %v3483_v1  ;;  %v656_v23 = vsel %vm375_vm1, %v345_v18, 0 }
 0x1f8   :  { %v337_v17 = vpop.permute.xlu0 %336  ;;  %3080 = vmatpush3.bf16.xpose.msra.mxu1 %v610_v16  ;;  %3081 = vmatprep.mubr.msk.bf16.mxu1 %vm3485_vm0, %v3483_v1 }
 0x1f9   :  { %3091 = vmatprep.subr.bf16.mxu1 %v3483_v1  ;;  %v346_v21 = vpack.c.bf16 %v337_v17, %v337_v17 }
 0x1fb   :  { %v702_v24 = vsel %vm375_vm1, %v346_v21, 0 }
 0x1fc   :  { %v309_v26 = vpop.permute.xlu0 %308 }
 0x1fd   :  { %3076 = vmatmul.mubr.msk.bf16.vlgmr.msra.gmra.mrb[8].mxu0 %vm375_vm1, %v315_v20  ;;  %v318_v28 = vpack.c.bf16 %v309_v26, %v309_v26 }
 0x1fe   :  { %3086 = vmatpush3.bf16.xpose.msra.mxu0 %v656_v23  ;;  %3087 = vmatprep.mubr.msk.bf16.mxu0 %vm3485_vm0, %v3483_v1 }
 0x1ff   :  { %3082 = vmatmul.mubr.msk.bf16.vlgmr.msra.gmra.mrb[20].mxu1 %vm375_vm1, %v316_v22  ;;  %3097 = vmatprep.subr.bf16.mxu0 %v3483_v1 }
 0x200   :  { %3092 = vmatpush3.bf16.xpose.msra.mxu1 %v702_v24  ;;  %3093 = vmatprep.mubr.msk.bf16.mxu1 %vm3485_vm0, %v3483_v1 }
 0x201   :  { %3103 = vmatprep.subr.bf16.mxu1 %v3483_v1 }
 0x205   :  { %3088 = vmatmul.mubr.msk.bf16.vlgmr.msra.gmra.mrb[12].mxu0 %vm375_vm1, %v317_v27 }
 0x206   :  { %3099 = vmatprep.mubr.msk.bf16.mxu0 %vm3485_vm0, %v3483_v1 }
 0x207   :  { %3094 = vmatmul.mubr.msk.bf16.vlgmr.msra.gmra.mrb[24].mxu1 %vm375_vm1, %v318_v28 }
 0x208   :  { %3105 = vmatprep.mubr.msk.bf16.mxu1 %vm3485_vm0, %v3483_v1 }
 0x247   :  { %v416_v29 = vpop.f32.mrb[4].mxu1 }
 0x248   :  { %v3748_v30 = vmul.f32 0.35355338, %v416_v29  ;;  %v3053_v31 = vpop.f32.mrb[5].mxu1 }
 0x249   :  { %v419_v32 = vpop.f32.mrb[6].mxu1 }
 0x24a   :  { %v3054_v33 = vpop.f32.mrb[7].mxu1  ;;  %v752_v34 = vsel %vm375_vm1, %v3748_v30, -inf }
 0x24b   :  { %753 = vmax.xlane.f32.xlu1 %v752_v34 }
 0x2ba   :  { %v462_v35 = vpop.f32.mrb[8].mxu1 }
 0x2bb   :  { %v3752_v36 = vmul.f32 0.35355338, %v462_v35  ;;  %v3059_v37 = vpop.f32.mrb[9].mxu1 }
 0x2bc   :  { %v465_v38 = vpop.f32.mrb[10].mxu1 }
 0x2bd   :  { %v3060_v39 = vpop.f32.mrb[11].mxu1  ;;  %v755_v40 = vsel %vm375_vm1, %v3752_v36, -inf }
 0x2be   :  { %756 = vmax.xlane.f32.xlu0 %v755_v40 }
 0x2c2   :  { %v508_v41 = vpop.f32.mrb[12].mxu1 }
 0x2c3   :  { %v3756_v42 = vmul.f32 0.35355338, %v508_v41  ;;  %v3065_v43 = vpop.f32.mrb[13].mxu1  ;;  %v283_v44 = vpop.f32.mrb[4].mxu0 }
 0x2c4   :  { %v511_v45 = vpop.f32.mrb[14].mxu1  ;;  %v3047_v46 = vpop.f32.mrb[5].mxu0 }
 0x2c5   :  { %v3066_v47 = vpop.f32.mrb[15].mxu1  ;;  %v758_v48 = vsel %vm375_vm1, %v3756_v42, -inf  ;;  %v286_v49 = vpop.f32.mrb[6].mxu0 }
 0x2c6   :  { %759 = vmax.xlane.f32.xlu0 %v758_v48  ;;  %v3048_v50 = vpop.f32.mrb[7].mxu0 }
 0x2ca   :  { %v554_v51 = vpop.f32.mrb[16].mxu1 }
 0x2cb   :  { %v3071_v52 = vpop.f32.mrb[17].mxu1  ;;  %v747_v28 = vmul.f32 0.35355338, %v554_v51 }
 0x2cc   :  { %v557_v53 = vpop.f32.mrb[18].mxu1 }
 0x2cd   :  { %v3072_v54 = vpop.f32.mrb[19].mxu1 }
 0x2d0   :  { %v600_v55 = vpop.f32.mrb[8].mxu0 }
 0x2d1   :  { %v748_v56 = vmul.f32 0.35355338, %v600_v55  ;;  %v3077_v57 = vpop.f32.mrb[9].mxu0 }
 0x2d2   :  { %v603_v58 = vpop.f32.mrb[10].mxu0  ;;  %v646_v59 = vpop.f32.mrb[20].mxu1 }
 0x2d3   :  { %v3078_v60 = vpop.f32.mrb[11].mxu0  ;;  %v3083_v61 = vpop.f32.mrb[21].mxu1  ;;  %v764_v62 = vsel %vm375_vm1, %v748_v56, -inf  ;;  %v749_v29 = vmul.f32 0.35355338, %v646_v59 }
 0x2d4   :  { %v649_v63 = vpop.f32.mrb[22].mxu1  ;;  %765 = vmax.xlane.f32.xlu0 %v764_v62 }
 0x2d5   :  { %v3084_v8 = vpop.f32.mrb[23].mxu1  ;;  %v767_v31 = vsel %vm375_vm1, %v749_v29, -inf }
 0x2d8   :  { %v692_v10 = vpop.f32.mrb[12].mxu0  ;;  %v754_v39 = vpop.xlane.xlu1 %753 }
 0x2d9   :  { %v750_v11 = vmul.f32 0.35355338, %v692_v10  ;;  %v3089_v12 = vpop.f32.mrb[13].mxu0  ;;  %v776_v40 = vsub.f32 %v3748_v30, %v754_v39 }
 0x2da   :  { %v695_v13 = vpop.f32.mrb[14].mxu0  ;;  %v738_v14 = vpop.f32.mrb[24].mxu1 }
 0x2db   :  { %v3090_v15 = vpop.f32.mrb[15].mxu0  ;;  %v3095_v16 = vpop.f32.mrb[25].mxu1  ;;  %v770_v18 = vsel %vm375_vm1, %v750_v11, -inf  ;;  %v751_v32 = vmul.f32 0.35355338, %v738_v14 }
 0x2dc   :  { %v741_v17 = vpop.f32.mrb[26].mxu1  ;;  %771 = vmax.xlane.f32.xlu0 %v770_v18  ;;  %v784_v41 = vmul.f32 1.442695, %v776_v40 }
 0x2dd   :  { %v3096_v19 = vpop.f32.mrb[27].mxu1  ;;  %v773_v33 = vsel %vm375_vm1, %v751_v32, -inf }
 0x2de   :  { %3404 = vpow2.f32 %v784_v41 }
 0x2e8   :  { %v3405_v50 = vpop.eup %3404 }
 0x2e9   :  { %v800_v52 = vsel %vm375_vm1, %v3405_v50, 0.0 }
 0x2f2   :  { %246 = vrot.lane.b32.xlu0 %v3614_v9, %s3486_s24  ;;  %v761_v9 = vsel %vm375_vm1, %v747_v28, -inf }
 0x34b   :  { %v757_v20 = vpop.xlane.xlu0 %756 }
 0x353   :  { %v760_v21 = vpop.xlane.xlu0 %759 }
 0x354   :  { %v778_v48 = vsub.f32 %v3756_v42, %v760_v21 }
 0x356   :  { %v788_v51 = vmul.f32 1.442695, %v778_v48 }
 0x361   :  { %v766_v22 = vpop.xlane.xlu0 %765 }
 0x362   :  { %v780_v43 = vsub.f32 %v748_v56, %v766_v22 }
 0x364   :  { %v792_v45 = vmul.f32 1.442695, %v780_v43 }
 0x366   :  { %3406 = vpow2.f32 %v792_v45 }
 0x369   :  { %v772_v23 = vpop.xlane.xlu0 %771 }
 0x36a   :  { %v782_v47 = vsub.f32 %v750_v11, %v772_v23 }
 0x36d   :  { %v247_v24 = vpop.permute.xlu0 %246 }
 0x36e   :  { %v284_v25 = vadd.f32 %v283_v44, %v247_v24  ;;  %v3772_v34 = vadd.f32 %v286_v49, %v247_v24  ;;  %v777_v44 = vsub.f32 %v3752_v36, %v757_v20  ;;  %v796_v49 = vmul.f32 1.442695, %v782_v47 }
 0x370   :  { %351 = vrot.lane.b32.xlu1 %v284_v25, %s3488_s1  ;;  %348 = vrot.lane.b32.xlu0 %v284_v25, %s3487_s12  ;;  %v367_v26 = vpack.c.bf16 %v284_v25, %v284_v25  ;;  %v786_v46 = vmul.f32 1.442695, %v777_v44  ;;  %v3782_v53 = vpop.eup %3406  ;;  %v371_v40 = vpack.c.bf16 %v3772_v34, %v3772_v34 }
 0x371   :  { %v812_v30 = vsel %vm375_vm1, %v3782_v53, 0.0 }
 0x372   :  { %v853_v27 = vsel %vm851_vm2, %v367_v26, 0  ;;  %3408 = vpow2.f32 %v786_v46  ;;  %v1037_v44 = vsel %vm851_vm2, %v371_v40, 0 }
 0x373   :  { %3098 = vmatpush3.bf16.msra.mxu0 %v853_v27  ;;  %3410 = vpow2.f32 %v796_v49 }
 0x374   :  { %3109 = vmatprep.subr.bf16.mxu0 %v3483_v1  ;;  %3412 = vpow2.f32 %v788_v51 }
 0x37c   :  { %v3409_v36 = vpop.eup %3408 }
 0x37d   :  { %v803_v54 = vsel %vm375_vm1, %v3409_v36, 0.0  ;;  %v3787_v55 = vpop.eup %3410 }
 0x37e   :  { %v818_v42 = vsel %vm375_vm1, %v3787_v55, 0.0  ;;  %v3413_v56 = vpop.eup %3412 }
 0x37f   :  { %v806_v57 = vsel %vm375_vm1, %v3413_v56, 0.0 }
 0x394   :  { %762 = vmax.xlane.f32.xlu1 %v761_v9 }
 0x398   :  { %768 = vmax.xlane.f32.xlu1 %v767_v31 }
 0x3a9   :  { %354 = vrot.lane.b32.xlu1 %v284_v25, %s3489_s13 }
 0x3cd   :  { %774 = vmax.xlane.f32.xlu1 %v773_v33 }
 0x3de   :  { %358 = vrot.lane.b32.xlu1 %v3772_v34, %s3487_s12 }
 0x3e2   :  { %v349_v35 = vpop.permute.xlu0 %348  ;;  %v352_v58 = vpop.permute.xlu1 %351 }
 0x3e3   :  { %v368_v37 = vpack.c.bf16 %v349_v35, %v349_v35  ;;  %v369_v25 = vpack.c.bf16 %v352_v58, %v352_v58 }
 0x3e5   :  { %v899_v38 = vsel %vm851_vm2, %v368_v37, 0  ;;  %v945_v9 = vsel %vm851_vm2, %v369_v25, 0 }
 0x3e6   :  { %3104 = vmatpush3.bf16.msra.mxu1 %v899_v38 }
 0x3e7   :  { %3115 = vmatprep.subr.bf16.mxu1 %v3483_v1 }
 0x402   :  { %801 = vadd.xlane.f32.xlu1 %v800_v52 }
 0x406   :  { %813 = vadd.xlane.f32.xlu1 %v812_v30 }
 0x40a   :  { %804 = vadd.xlane.f32.xlu1 %v803_v54 }
 0x40e   :  { %819 = vadd.xlane.f32.xlu1 %v818_v42 }
 0x412   :  { %807 = vadd.xlane.f32.xlu1 %v806_v57 }
 0x421   :  { %v763_v59 = vpop.xlane.xlu1 %762 }
 0x422   :  { %v779_v60 = vsub.f32 %v747_v28, %v763_v59 }
 0x424   :  { %v790_v61 = vmul.f32 1.442695, %v779_v60 }
 0x425   :  { %v769_v62 = vpop.xlane.xlu1 %768 }
 0x426   :  { %3414 = vpow2.f32 %v790_v61  ;;  %v781_v63 = vsub.f32 %v749_v29, %v769_v62 }
 0x428   :  { %v794_v8 = vmul.f32 1.442695, %v781_v63 }
 0x429   :  { %v355_v14 = vpop.permute.xlu1 %354 }
 0x42a   :  { %3416 = vpow2.f32 %v794_v8 }
 0x430   :  { %v3792_v10 = vpop.eup %3414 }
 0x431   :  { %v809_v11 = vsel %vm375_vm1, %v3792_v10, 0.0 }
 0x432   :  { %810 = vadd.xlane.f32.xlu1 %v809_v11 }
 0x434   :  { %v3796_v12 = vpop.eup %3416 }
 0x435   :  { %v815_v13 = vsel %vm375_vm1, %v3796_v12, 0.0 }
 0x436   :  { %816 = vadd.xlane.f32.xlu1 %v815_v13 }
 0x447   :  { %361 = vrot.lane.b32.xlu1 %v3772_v34, %s3488_s1 }
 0x45a   :  { %v775_v15 = vpop.xlane.xlu1 %774 }
 0x45b   :  { %v783_v16 = vsub.f32 %v751_v32, %v775_v15  ;;  %v370_v32 = vpack.c.bf16 %v355_v14, %v355_v14 }
 0x45d   :  { %v798_v17 = vmul.f32 1.442695, %v783_v16  ;;  %v991_v37 = vsel %vm851_vm2, %v370_v32, 0 }
 0x45e   :  { %v359_v20 = vpop.permute.xlu1 %358 }
 0x45f   :  { %3418 = vpow2.f32 %v798_v17  ;;  %v372_v30 = vpack.c.bf16 %v359_v20, %v359_v20 }
 0x461   :  { %v1083_v57 = vsel %vm851_vm2, %v372_v30, 0  ;;  %v3383_v30 = vld [vmem:[%s4286_s3 + $0x54] ss:$8 sps:$4 sm:$0xff]  }
 0x469   :  { %v3802_v18 = vpop.eup %3418 }
 0x46a   :  { %v821_v19 = vsel %vm375_vm1, %v3802_v18, 0.0 }
 0x46b   :  { %822 = vadd.xlane.f32.xlu0 %v821_v19 }
 0x481   :  { %364 = vrot.lane.b32.xlu0 %v3772_v34, %s3489_s13 }
 0x48f   :  { %v802_v21 = vpop.xlane.xlu1 %801 }
 0x490   :  { %3420 = vrcp.f32 %v802_v21 }
 0x493   :  { %v814_v22 = vpop.xlane.xlu1 %813 }
 0x497   :  { %v805_v23 = vpop.xlane.xlu1 %804 }
 0x498   :  { %3422 = vrcp.f32 %v805_v23 }
 0x49a   :  { %v3421_v24 = vpop.eup %3420 }
 0x49b   :  { %v832_v26 = vmul.f32 %v3421_v24, %v3405_v50  ;;  %v820_v27 = vpop.xlane.xlu1 %819 }
 0x49d   :  { %v840_v28 = vpack.c.bf16 %v832_v26, %v832_v26 }
 0x49f   :  { %v808_v29 = vpop.xlane.xlu1 %807  ;;  %3100 = vmatmul.mubr.msk.bf16.vlgmr.msra.gmra.mrb[16].mxu0 %vm375_vm1, %v840_v28 }
 0x4a0   :  { %3424 = vrcp.f32 %v808_v29  ;;  %3110 = vmatpush3.bf16.msra.mxu0 %v945_v9  ;;  %3111 = vmatprep.mubr.msk.bf16.mxu0 %vm3485_vm0, %v3483_v1 }
 0x4a1   :  { %3121 = vmatprep.subr.bf16.mxu0 %v3483_v1  ;;  %3426 = vrcp.f32 %v814_v22 }
 0x4a2   :  { %v3423_v31 = vpop.eup %3422  ;;  %3428 = vrcp.f32 %v820_v27 }
 0x4a3   :  { %v833_v33 = vmul.f32 %v3423_v31, %v3409_v36 }
 0x4a5   :  { %v841_v35 = vpack.c.bf16 %v833_v33, %v833_v33 }
 0x4a7   :  { %3106 = vmatmul.mubr.msk.bf16.vlgmr.msra.gmra.mrb[28].mxu1 %vm375_vm1, %v841_v35 }
 0x4a8   :  { %3116 = vmatpush3.bf16.msra.mxu1 %v991_v37  ;;  %3117 = vmatprep.mubr.msk.bf16.mxu1 %vm3485_vm0, %v3483_v1 }
 0x4a9   :  { %3127 = vmatprep.subr.bf16.mxu1 %v3483_v1 }
 0x4aa   :  { %v3425_v38 = vpop.eup %3424 }
 0x4ab   :  { %v834_v39 = vmul.f32 %v3425_v38, %v3413_v56  ;;  %v3427_v43 = vpop.eup %3426  ;;  %v3374_v38 = vld [vmem:[%s4291_s4] ss:$8 sps:$4 sm:$0xff]  }
 0x4ac   :  { %v836_v45 = vmul.f32 %v3427_v43, %v3782_v53  ;;  %v3429_v48 = vpop.eup %3428 }
 0x4ad   :  { %v842_v41 = vpack.c.bf16 %v834_v39, %v834_v39  ;;  %v838_v50 = vmul.f32 %v3429_v48, %v3787_v55 }
 0x4ae   :  { %v844_v46 = vpack.c.bf16 %v836_v45, %v836_v45  ;;  %v3376_v45 = vld [vmem:[%s4291_s4 + $0x10] ss:$8 sps:$4 sm:$0xff]  }
 0x4af   :  { %3112 = vmatmul.mubr.msk.bf16.vlgmr.msra.gmra.mrb[20].mxu0 %vm375_vm1, %v842_v41  ;;  %v846_v54 = vpack.c.bf16 %v838_v50, %v838_v50  ;;  %v3381_v50 = vld [vmem:[%s4286_s3 + $0x34] ss:$8 sps:$4 sm:$0xff]  }
 0x4b0   :  { %3122 = vmatpush3.bf16.msra.mxu0 %v1037_v44  ;;  %3123 = vmatprep.mubr.msk.bf16.mxu0 %vm3485_vm0, %v3483_v1 }
 0x4b1   :  { %3133 = vmatprep.subr.bf16.mxu0 %v3483_v1 }
 0x4b7   :  { %3124 = vmatmul.mubr.msk.bf16.vlgmr.msra.gmra.mrb[24].mxu0 %vm375_vm1, %v844_v46  ;;  %v3378_v46 = vld [vmem:[%s4286_s3 + $0x4] ss:$8 sps:$4 sm:$0xff]  }
 0x4b8   :  { %3135 = vmatprep.mubr.msk.bf16.mxu0 %vm3485_vm0, %v3483_v1  ;;  %1385 = vrot.lane.b32.xlu0 %v3378_v46, %s3492_s26 }
 0x4bf   :  { %v811_v34 = vpop.xlane.xlu1 %810 }
 0x4c0   :  { %3430 = vrcp.f32 %v811_v34  ;;  %v3380_v34 = vld [vmem:[%s4286_s3 + $0x24] ss:$8 sps:$4 sm:$0xff]  }
 0x4c1   :  { %1393 = vrot.lane.b32.xlu0 %v3380_v34, %s3492_s26 }
 0x4c3   :  { %v817_v47 = vpop.xlane.xlu1 %816 }
 0x4c4   :  { %3432 = vrcp.f32 %v817_v47 }
 0x4c5   :  { %1397 = vrot.lane.b32.xlu0 %v3381_v50, %s3492_s26 }
 0x4c7   :  { %v362_v49 = vpop.permute.xlu1 %361 }
 0x4c8   :  { %v373_v51 = vpack.c.bf16 %v362_v49, %v362_v49 }
 0x4ca   :  { %v3431_v52 = vpop.eup %3430  ;;  %v1129_v53 = vsel %vm851_vm2, %v373_v51, 0 }
 0x4cb   :  { %v835_v36 = vmul.f32 %v3431_v52, %v3792_v10  ;;  %3134 = vmatpush3.bf16.msra.mxu0 %v1129_v53  ;;  %v3382_v53 = vld [vmem:[%s4286_s3 + $0x44] ss:$8 sps:$4 sm:$0xff]  }
 0x4cc   :  { %3145 = vmatprep.subr.bf16.mxu0 %v3483_v1  ;;  %1401 = vrot.lane.b32.xlu0 %v3382_v53, %s3492_s26 }
 0x4cd   :  { %v843_v42 = vpack.c.bf16 %v835_v36, %v835_v36  ;;  %v3379_v36 = vld [vmem:[%s4286_s3 + $0x14] ss:$8 sps:$4 sm:$0xff]  }
 0x4ce   :  { %v3433_v56 = vpop.eup %3432  ;;  %3136 = vmatmul.mubr.msk.bf16.vlgmr.msra.gmra.mrb[28].mxu0 %vm375_vm1, %v846_v54 }
 0x4cf   :  { %3118 = vmatmul.mubr.msk.bf16.vlgmr.msra.gmra.mrb[32].mxu1 %vm375_vm1, %v843_v42  ;;  %3149 = vmatprep.mubr.msk.bf16.mxu0 %vm3485_vm0, %v3483_v1  ;;  %v837_v55 = vmul.f32 %v3433_v56, %v3796_v12 }
 0x4d0   :  { %3128 = vmatpush3.bf16.msra.mxu1 %v1083_v57  ;;  %3129 = vmatprep.mubr.msk.bf16.mxu1 %vm3485_vm0, %v3483_v1 }
 0x4d1   :  { %3139 = vmatprep.subr.bf16.mxu1 %v3483_v1  ;;  %v845_v58 = vpack.c.bf16 %v837_v55, %v837_v55  ;;  %3146 = vmatpush3.bf16.msra.mxu0 %v3374_v38 }
 0x4d2   :  { %3147 = vmatprep.subr.bf16.mxu0 %v3483_v1  ;;  %1405 = vrot.lane.b32.xlu0 %v3383_v30, %s3492_s26 }
 0x4d5   :  { %3148 = vmatpush3.bf16.msra.mxu0 %v3376_v45 }
 0x4d6   :  { %3173 = vmatprep.subr.bf16.mxu0 %v3483_v1 }
 0x4d7   :  { %3130 = vmatmul.mubr.msk.bf16.vlgmr.msra.gmra.mrb[36].mxu1 %vm375_vm1, %v845_v58 }
 0x4d8   :  { %3141 = vmatprep.mubr.msk.bf16.mxu1 %vm3485_vm0, %v3483_v1 }
 0x4f8   :  { %v823_v59 = vpop.xlane.xlu0 %822 }
 0x4f9   :  { %3434 = vrcp.f32 %v823_v59 }
 0x4fc   :  { %v365_v60 = vpop.permute.xlu0 %364 }
 0x4fd   :  { %v374_v61 = vpack.c.bf16 %v365_v60, %v365_v60 }
 0x4ff   :  { %v1175_v62 = vsel %vm851_vm2, %v374_v61, 0 }
 0x500   :  { %3140 = vmatpush3.bf16.msra.mxu1 %v1175_v62 }
 0x501   :  { %3153 = vmatprep.subr.bf16.mxu1 %v3483_v1 }
 0x503   :  { %v3435_v63 = vpop.eup %3434 }
 0x504   :  { %v839_v8 = vmul.f32 %v3435_v63, %v3802_v18 }
 0x506   :  { %v847_v10 = vpack.c.bf16 %v839_v8, %v839_v8 }
 0x508   :  { %3142 = vmatmul.mubr.msk.bf16.vlgmr.msra.gmra.mrb[40].mxu1 %vm375_vm1, %v847_v10 }
 0x509   :  { %3169 = vmatprep.mubr.msk.bf16.mxu1 %vm3485_vm0, %v3483_v1 }
 0x52a   :  { %v1386_v63 = vpop.permute.xlu0 %1385 }
 0x572   :  { %v3851_v11 = vpop.f32.mrb[16].mxu0 }
 0x573   :  { %v3101_v12 = vpop.f32.mrb[17].mxu0 }
 0x574   :  { %v892_v13 = vpop.f32.mrb[18].mxu0 }
 0x575   :  { %v3102_v14 = vpop.f32.mrb[19].mxu0 }
 0x57a   :  { %v935_v15 = vpop.f32.mrb[28].mxu1 }
 0x57b   :  { %v3107_v16 = vpop.f32.mrb[29].mxu1 }
 0x57c   :  { %v938_v17 = vpop.f32.mrb[30].mxu1 }
 0x57d   :  { %v3108_v19 = vpop.f32.mrb[31].mxu1 }
 0x582   :  { %v981_v20 = vpop.f32.mrb[20].mxu0 }
 0x583   :  { %v3113_v21 = vpop.f32.mrb[21].mxu0 }
 0x584   :  { %v984_v22 = vpop.f32.mrb[22].mxu0 }
 0x585   :  { %v3114_v23 = vpop.f32.mrb[23].mxu0 }
 0x58a   :  { %v3853_v18 = vpop.f32.mrb[24].mxu0 }
 0x58b   :  { %v3125_v24 = vpop.f32.mrb[25].mxu0 }
 0x58c   :  { %v1076_v25 = vpop.f32.mrb[26].mxu0 }
 0x58d   :  { %v3126_v26 = vpop.f32.mrb[27].mxu0  ;;  %v2808_v25 = vld [vmem:[%s4292_s7] ss:$0 sm:$0xff] }
 0x5a1   :  { %v1165_v27 = vpop.f32.mrb[28].mxu0 }
 0x5a2   :  { %v3333_v28 = vpack.i.bf16 %v1165_v27, %v981_v20  ;;  %v1027_v29 = vpop.f32.mrb[32].mxu1  ;;  %v3137_v9 = vpop.f32.mrb[29].mxu0 }
 0x5a3   :  { %v3119_v31 = vpop.f32.mrb[33].mxu1  ;;  %v1168_v32 = vpop.f32.mrb[30].mxu0  ;;  %v3480_v9 = vld [vmem:[%s4288_s0] sm:$0xff] }
 0x5a4   :  { %v1030_v33 = vpop.f32.mrb[34].mxu1  ;;  %v3138_v35 = vpop.f32.mrb[31].mxu0 }
 0x5a5   :  { %v3120_v37 = vpop.f32.mrb[35].mxu1  ;;  %v3481_v35 = vld [vmem:[%s4288_s0 + $0x8] sm:$0xff] }
 0x5aa   :  { %v1119_v39 = vpop.f32.mrb[36].mxu1 }
 0x5ab   :  { %v3328_v40 = vpack.i.bf16 %v1119_v39, %v935_v15  ;;  %v3131_v41 = vpop.f32.mrb[37].mxu1 }
 0x5ac   :  { %v1122_v43 = vpop.f32.mrb[38].mxu1  ;;  %v3384_v41 = vld [vmem:[%s4286_s3 + $0x64] ss:$8 sps:$4 sm:$0xff]  }
 0x5ad   :  { %3329 = vrot.lane.b32.xlu1 %v3328_v40, %s3490_s19  ;;  %v3132_v44 = vpop.f32.mrb[39].mxu1  ;;  %v3482_v40 = vld [vmem:[%s4286_s3 + $0x70] ss:$8 sps:$4 sm:$0xff]   ;;  %v3385_v43 = vld [vmem:[%s4286_s3 + $0x74] ss:$8 sps:$4 sm:$0xff]  }
 0x5b1   :  { %3334 = vrot.lane.b32.xlu1 %v3333_v28, %s3491_s20 }
 0x5db   :  { %v1211_v47 = vpop.f32.mrb[40].mxu1 }
 0x5dc   :  { %v3338_v48 = vpack.i.bf16 %v1211_v47, %v1027_v29  ;;  %v3143_v49 = vpop.f32.mrb[41].mxu1 }
 0x5dd   :  { %v1214_v51 = vpop.f32.mrb[42].mxu1 }
 0x5de   :  { %v3144_v52 = vpop.f32.mrb[43].mxu1  ;;  %3339 = vrot.lane.b32.xlu1 %v3338_v48, %s3493_s10 }
 0x5e2   :  { %1383 = vrot.lane.b32.xlu1 %v3542_v0, %s3492_s26 }
 0x5e6   :  { %1387 = vrot.lane.b32.xlu1 %v3549_v2, %s3492_s26 }
 0x5ea   :  { %1389 = vrot.lane.b32.xlu1 %v3379_v36, %s3492_s26 }
 0x5ee   :  { %1391 = vrot.lane.b32.xlu1 %v3556_v3, %s3492_s26 }
 0x5f2   :  { %1395 = vrot.lane.b32.xlu1 %v3567_v4, %s3492_s26 }
 0x5f6   :  { %1399 = vrot.lane.b32.xlu1 %v3576_v5, %s3492_s26 }
 0x5fa   :  { %1403 = vrot.lane.b32.xlu1 %v3585_v6, %s3492_s26 }
 0x5fe   :  { %1407 = vrot.lane.b32.xlu1 %v3592_v7, %s3492_s26 }
 0x61f   :  { %v3330_v0 = vpop.permute.xlu1 %3329 }
 0x620   :  { %v3332_v54 = vunpack.i.h.bf16 %v3330_v0  ;;  %v3331_v42 = vunpack.i.l.bf16 %v3330_v0 }
 0x622   :  { %v1241_v4 = vsel %vm375_vm1, %v3851_v11, %v3331_v42  ;;  %v1242_v5 = vsel %vm375_vm1, %v3853_v18, %v3332_v54  ;;  %v1394_v11 = vpop.permute.xlu0 %1393 }
 0x623   :  { %v3335_v2 = vpop.permute.xlu1 %3334 }
 0x624   :  { %v3337_v56 = vunpack.i.h.bf16 %v3335_v2  ;;  %v3336_v57 = vunpack.i.l.bf16 %v3335_v2 }
 0x626   :  { %v1245_v58 = vsel %vm1243_vm3, %v1242_v5, %v3337_v56  ;;  %v1244_v7 = vsel %vm1243_vm3, %v1241_v4, %v3336_v57  ;;  %v1398_v14 = vpop.permute.xlu0 %1397 }
 0x62a   :  { %v1402_v19 = vpop.permute.xlu0 %1401 }
 0x62e   :  { %v1406_v23 = vpop.permute.xlu0 %1405 }
 0x650   :  { %v3340_v3 = vpop.permute.xlu1 %3339 }
 0x651   :  { %v3342_v55 = vunpack.i.h.bf16 %v3340_v3  ;;  %v3341_v6 = vunpack.i.l.bf16 %v3340_v3 }
 0x653   :  { %v1247_v59 = vsel %vm1246_vm4, %v1244_v7, %v3341_v6  ;;  %v1248_v60 = vsel %vm1246_vm4, %v1245_v58, %v3342_v55  ;;  %v2812_v55 = vld [vmem:[%s4292_s7 + $0x1] ss:$0 sm:$0xff] }
 0x654   :  { %v1249_v61 = vpack.c.bf16 %v1248_v60, %v1247_v59  ;;  %v1384_v62 = vpop.permute.xlu1 %1383 }
 0x655   :  { %v1416_v8 = vsel %vm1266_vm5, %v1384_v62, %v1386_v63 }
 0x656   :  { %3150 = vmatmul.mubr.msk.bf16.vlgmr.msra.gmra.mrb[32].mxu0 %vm1266_vm5, %v1249_v61  ;;  %3154 = vmatpush3.bf16.msra.mxu1 %v1416_v8  ;;  %v2813_v61 = vld [vmem:[%s4292_s7 + $0x2] ss:$0 sm:$0xff] }
 0x657   :  { %3175 = vmatprep.mubr.msk.bf16.mxu0 %vm3485_vm0, %v3483_v1  ;;  %3155 = vmatprep.subr.bf16.mxu1 %v3483_v1 }
 0x658   :  { %v1388_v10 = vpop.permute.xlu1 %1387 }
 0x65c   :  { %v1390_v12 = vpop.permute.xlu1 %1389 }
 0x65d   :  { %v1417_v13 = vsel %vm1266_vm5, %v1388_v10, %v1390_v12 }
 0x65e   :  { %3156 = vmatpush3.bf16.msra.mxu1 %v1417_v13 }
 0x65f   :  { %3157 = vmatprep.subr.bf16.mxu1 %v3483_v1 }
 0x660   :  { %v1392_v15 = vpop.permute.xlu1 %1391 }
 0x661   :  { %v1418_v16 = vsel %vm1266_vm5, %v1392_v15, %v1394_v11  ;;  %v2814_v11 = vld [vmem:[%s4287_s6 + $0x1] ss:$0 sm:$0xff] }
 0x662   :  { %3158 = vmatpush3.bf16.msra.mxu1 %v1418_v16 }
 0x663   :  { %3159 = vmatprep.subr.bf16.mxu1 %v3483_v1 }
 0x664   :  { %v1396_v17 = vpop.permute.xlu1 %1395 }
 0x665   :  { %v1419_v20 = vsel %vm1266_vm5, %v1396_v17, %v1398_v14 }
 0x666   :  { %3160 = vmatpush3.bf16.msra.mxu1 %v1419_v20 }
 0x667   :  { %3161 = vmatprep.subr.bf16.mxu1 %v3483_v1 }
 0x668   :  { %v1400_v21 = vpop.permute.xlu1 %1399 }
 0x669   :  { %v1420_v22 = vsel %vm1266_vm5, %v1400_v21, %v1402_v19 }
 0x66a   :  { %3162 = vmatpush3.bf16.msra.mxu1 %v1420_v22 }
 0x66b   :  { %3163 = vmatprep.subr.bf16.mxu1 %v3483_v1 }
 0x66c   :  { %v1404_v18 = vpop.permute.xlu1 %1403 }
 0x66d   :  { %v1421_v24 = vsel %vm1266_vm5, %v1404_v18, %v1406_v23 }
 0x66e   :  { %3164 = vmatpush3.bf16.msra.mxu1 %v1421_v24 }
 0x66f   :  { %3165 = vmatprep.subr.bf16.mxu1 %v3483_v1 }
 0x670   :  { %v1408_v44 = vpop.permute.xlu1 %1407 }
 0x729   :  { %v1304_v26 = vpop.f32.mrb[32].mxu0 }
 0x72a   :  { %v1305_v27 = vadd.f32 %v2808_v25, %v1304_v26  ;;  %v3151_v28 = vpop.f32.mrb[33].mxu0 }
 0x72b   :  { %v1307_v29 = vpop.f32.mrb[34].mxu0 }
 0x72c   :  { %v1311_v31 = vadd.f32 %v3480_v9, %v1305_v27  ;;  %v1308_v32 = vadd.f32 %v2808_v25, %v1307_v29  ;;  %v3152_v33 = vpop.f32.mrb[35].mxu0 }
 0x72e   :  { %v1312_v37 = vadd.f32 %v3481_v35, %v1308_v32  ;;  %1315 = vadd.xlane.f32.xlu1 %v1311_v31  ;;  %v1321_v38 = vmul.f32 %v1311_v31, %v1311_v31 }
 0x730   :  { %1317 = vadd.xlane.f32.xlu0 %v1312_v37  ;;  %v1322_v39 = vmul.f32 %v1312_v37, %v1312_v37 }
 0x732   :  { %1323 = vadd.xlane.f32.xlu1 %v1321_v38 }
 0x734   :  { %1325 = vadd.xlane.f32.xlu0 %v1322_v39 }
 0x743   :  { %1411 = vrot.lane.b32.xlu1 %v3482_v40, %s3492_s26 }
 0x74a   :  { %1409 = vrot.lane.b32.xlu0 %v3384_v41, %s3492_s26 }
 0x74e   :  { %1413 = vrot.lane.b32.xlu0 %v3385_v43, %s3492_s26 }
 0x7bb   :  { %v1316_v45 = vpop.xlane.xlu1 %1315 }
 0x7bc   :  { %v1319_v46 = vmul.f32 0.03125, %v1316_v45 }
 0x7bd   :  { %v1318_v34 = vpop.xlane.xlu0 %1317 }
 0x7be   :  { %v1320_v47 = vmul.f32 0.03125, %v1318_v34  ;;  %v1329_v49 = vmul.f32 %v1319_v46, %v1319_v46  ;;  %v1333_v4 = vsub.f32 %v1311_v31, %v1319_v46 }
 0x7bf   :  { %v1324_v48 = vpop.xlane.xlu1 %1323 }
 0x7c0   :  { %v1327_v50 = vmul.f32 0.03125, %v1324_v48  ;;  %v1330_v52 = vmul.f32 %v1320_v47, %v1320_v47  ;;  %v1334_v6 = vsub.f32 %v1312_v37, %v1320_v47 }
 0x7c1   :  { %v1326_v51 = vpop.xlane.xlu0 %1325 }
 0x7c2   :  { %v1331_v53 = vsub.f32 %v1327_v50, %v1329_v49  ;;  %v1328_v30 = vmul.f32 0.03125, %v1326_v51 }
 0x7c3   :  { %v1412_v56 = vpop.permute.xlu1 %1411 }
 0x7c4   :  { %v1335_v36 = vadd.f32 1e-05, %v1331_v53  ;;  %v1332_v0 = vsub.f32 %v1328_v30, %v1330_v52 }
 0x7c5   :  { %v1410_v2 = vpop.permute.xlu0 %1409 }
 0x7c6   :  { %3436 = vrsqrt.f32 %v1335_v36  ;;  %v1336_v54 = vadd.f32 1e-05, %v1332_v0  ;;  %v1422_v42 = vsel %vm1266_vm5, %v1408_v44, %v1410_v2 }
 0x7c7   :  { %3166 = vmatpush3.bf16.msra.mxu1 %v1422_v42 }
 0x7c8   :  { %3438 = vrsqrt.f32 %v1336_v54  ;;  %3167 = vmatprep.subr.bf16.mxu1 %v3483_v1 }
 0x7c9   :  { %v1414_v57 = vpop.permute.xlu0 %1413 }
 0x7ca   :  { %v1423_v3 = vsel %vm1266_vm5, %v1412_v56, %v1414_v57 }
 0x7cb   :  { %3168 = vmatpush3.bf16.msra.mxu1 %v1423_v3 }
 0x7cc   :  { %3197 = vmatprep.subr.bf16.mxu1 %v3483_v1 }
 0x7d0   :  { %v3437_v5 = vpop.eup %3436 }
 0x7d1   :  { %v1339_v58 = vmul.f32 %v3437_v5, %v1333_v4 }
 0x7d2   :  { %v3439_v7 = vpop.eup %3438 }
 0x7d3   :  { %v1340_v59 = vmul.f32 %v3439_v7, %v1334_v6  ;;  %v1345_v60 = vmul.f32 %v2812_v55, %v1339_v58 }
 0x7d5   :  { %v1346_v62 = vmul.f32 %v2812_v55, %v1340_v59  ;;  %v3958_v63 = vadd.f32 %v2813_v61, %v1345_v60 }
 0x7d7   :  { %v3960_v8 = vadd.f32 %v2813_v61, %v1346_v62 }
 0x7d9   :  { %v1353_v10 = vpack.c.bf16 %v3960_v8, %v3958_v63 }
 0x7db   :  { %3170 = vmatmul.mubr.bf16.vlgmr.msra.gmra.mrb[44].mxu1 %v1353_v10 }
 0x7dc   :  { %3199 = vmatprep.mubr.msk.bf16.mxu1 %vm3485_vm0, %v3483_v1 }
 0x8ae   :  { %v1466_v12 = vpop.f32.mrb[44].mxu1 }
 0x8af   :  { %v1467_v13 = vadd.f32 %v2814_v11, %v1466_v12  ;;  %v3171_v14 = vpop.f32.mrb[45].mxu1 }
 0x8b0   :  { %v1469_v15 = vpop.f32.mrb[46].mxu1 }
 0x8b1   :  { %1478 = vrot.lane.b32.xlu0 %v1467_v13, %s3488_s1  ;;  %1475 = vrot.lane.b32.xlu1 %v1467_v13, %s3487_s12  ;;  %v3172_v16 = vpop.f32.mrb[47].mxu1  ;;  %v1470_v17 = vadd.f32 %v2814_v11, %v1469_v15  ;;  %v3975_v19 = vpack.c.bf16 %v1467_v13, %v1467_v13 }
 0x8b3   :  { %v3989_v26 = vpack.c.bf16 %v1470_v17, %v1470_v17 }
 0x8b5   :  { %1481 = vrot.lane.b32.xlu1 %v1467_v13, %s3489_s13  ;;  %1485 = vrot.lane.b32.xlu0 %v1470_v17, %s3487_s12 }
 0x8b9   :  { %1488 = vrot.lane.b32.xlu1 %v1470_v17, %s3488_s1  ;;  %1491 = vrot.lane.b32.xlu0 %v1470_v17, %s3489_s13 }
 0x8bd   :  { %1503 = vrot.lane.b32.xlu1 %v3975_v19, %s3484_s9 }
 0x923   :  { %v1479_v20 = vpop.permute.xlu0 %1478  ;;  %v1476_v21 = vpop.permute.xlu1 %1475 }
 0x924   :  { %v3979_v22 = vpack.c.bf16 %v1479_v20, %v1479_v20  ;;  %v3981_v23 = vpack.c.bf16 %v1476_v21, %v1476_v21 }
 0x926   :  { %1601 = vrot.lane.b32.xlu1 %v3979_v22, %s3484_s9  ;;  %1552 = vrot.lane.b32.xlu0 %v3981_v23, %s3484_s9 }
 0x927   :  { %v1482_v18 = vpop.permute.xlu1 %1481  ;;  %v1486_v24 = vpop.permute.xlu0 %1485 }
 0x928   :  { %v3987_v25 = vpack.c.bf16 %v1482_v18, %v1482_v18  ;;  %v3995_v28 = vpack.c.bf16 %v1486_v24, %v1486_v24 }
 0x92a   :  { %1650 = vrot.lane.b32.xlu0 %v3987_v25, %s3484_s9  ;;  %1699 = vrot.lane.b32.xlu1 %v3989_v26, %s3484_s9 }
 0x92b   :  { %v1489_v27 = vpop.permute.xlu1 %1488  ;;  %v1492_v9 = vpop.permute.xlu0 %1491 }
 0x92c   :  { %v3997_v29 = vpack.c.bf16 %v1489_v27, %v1489_v27  ;;  %v4003_v32 = vpack.c.bf16 %v1492_v9, %v1492_v9 }
 0x92e   :  { %1748 = vrot.lane.b32.xlu0 %v3995_v28, %s3484_s9  ;;  %1797 = vrot.lane.b32.xlu1 %v3997_v29, %s3484_s9 }
 0x92f   :  { %v1504_v31 = vpop.permute.xlu1 %1503 }
 0x930   :  { %v1509_v33 = vsel %vm375_vm1, %v1504_v31, 0 }
 0x931   :  { %3174 = vmatpush3.bf16.xpose.msra.mxu0 %v1509_v33 }
 0x932   :  { %1846 = vrot.lane.b32.xlu0 %v4003_v32, %s3484_s9  ;;  %3179 = vmatprep.subr.bf16.mxu0 %v3483_v1 }
 0x938   :  { %3176 = vmatmul.mubr.msk.bf16.vlgmr.msra.gmra.mrb[36].mxu0 %vm375_vm1, %v3975_v19 }
 0x939   :  { %3181 = vmatprep.mubr.msk.bf16.mxu0 %vm3485_vm0, %v3483_v1 }
 0x998   :  { %v1602_v35 = vpop.permute.xlu1 %1601  ;;  %v1553_v37 = vpop.permute.xlu0 %1552 }
 0x999   :  { %v1558_v38 = vsel %vm375_vm1, %v1553_v37, 0  ;;  %v1607_v41 = vsel %vm375_vm1, %v1602_v35, 0 }
 0x99a   :  { %3180 = vmatpush3.bf16.xpose.msra.mxu0 %v1558_v38 }
 0x99b   :  { %3185 = vmatprep.subr.bf16.mxu0 %v3483_v1 }
 0x99c   :  { %v1700_v39 = vpop.permute.xlu1 %1699  ;;  %v1651_v45 = vpop.permute.xlu0 %1650 }
 0x99d   :  { %v1705_v40 = vsel %vm375_vm1, %v1700_v39, 0  ;;  %v1656_v46 = vsel %vm375_vm1, %v1651_v45, 0 }
 0x99e   :  { %3198 = vmatpush3.bf16.xpose.msra.mxu1 %v1705_v40 }
 0x99f   :  { %3209 = vmatprep.subr.bf16.mxu1 %v3483_v1 }
 0x9a0   :  { %v1798_v43 = vpop.permute.xlu1 %1797  ;;  %v1749_v34 = vpop.permute.xlu0 %1748 }
 0x9a1   :  { %3182 = vmatmul.mubr.msk.bf16.vlgmr.msra.gmra.mrb[40].mxu0 %vm375_vm1, %v3981_v23  ;;  %v1803_v44 = vsel %vm375_vm1, %v1798_v43, 0  ;;  %v1754_v47 = vsel %vm375_vm1, %v1749_v34, 0 }
 0x9a2   :  { %3186 = vmatpush3.bf16.xpose.msra.mxu0 %v1607_v41  ;;  %3187 = vmatprep.mubr.msk.bf16.mxu0 %vm3485_vm0, %v3483_v1 }
 0x9a3   :  { %3191 = vmatprep.subr.bf16.mxu0 %v3483_v1 }
 0x9a4   :  { %v1847_v48 = vpop.permute.xlu0 %1846 }
 0x9a5   :  { %3200 = vmatmul.mubr.msk.bf16.vlgmr.msra.gmra.mrb[48].mxu1 %vm375_vm1, %v3989_v26  ;;  %v1852_v49 = vsel %vm375_vm1, %v1847_v48, 0 }
 0x9a6   :  { %3210 = vmatpush3.bf16.xpose.msra.mxu1 %v1803_v44  ;;  %3211 = vmatprep.mubr.msk.bf16.mxu1 %vm3485_vm0, %v3483_v1 }
 0x9a7   :  { %3221 = vmatprep.subr.bf16.mxu1 %v3483_v1 }
 0x9a9   :  { %3188 = vmatmul.mubr.msk.bf16.vlgmr.msra.gmra.mrb[44].mxu0 %vm375_vm1, %v3979_v22 }
 0x9aa   :  { %3192 = vmatpush3.bf16.xpose.msra.mxu0 %v1656_v46  ;;  %3193 = vmatprep.mubr.msk.bf16.mxu0 %vm3485_vm0, %v3483_v1 }
 0x9ab   :  { %3203 = vmatprep.subr.bf16.mxu0 %v3483_v1 }
 0x9ad   :  { %3212 = vmatmul.mubr.msk.bf16.vlgmr.msra.gmra.mrb[52].mxu1 %vm375_vm1, %v3997_v29 }
 0x9ae   :  { %3223 = vmatprep.mubr.msk.bf16.mxu1 %vm3485_vm0, %v3483_v1 }
 0x9b1   :  { %3194 = vmatmul.mubr.msk.bf16.vlgmr.msra.gmra.mrb[48].mxu0 %vm375_vm1, %v3987_v25 }
 0x9b2   :  { %3204 = vmatpush3.bf16.xpose.msra.mxu0 %v1754_v47  ;;  %3205 = vmatprep.mubr.msk.bf16.mxu0 %vm3485_vm0, %v3483_v1 }
 0x9b3   :  { %3215 = vmatprep.subr.bf16.mxu0 %v3483_v1 }
 0x9b9   :  { %3206 = vmatmul.mubr.msk.bf16.vlgmr.msra.gmra.mrb[52].mxu0 %vm375_vm1, %v3995_v28 }
 0x9ba   :  { %3216 = vmatpush3.bf16.xpose.msra.mxu0 %v1852_v49  ;;  %3217 = vmatprep.mubr.msk.bf16.mxu0 %vm3485_vm0, %v3483_v1 }
 0x9bb   :  { %3227 = vmatprep.subr.bf16.mxu0 %v3483_v1 }
 0x9c1   :  { %3218 = vmatmul.mubr.msk.bf16.vlgmr.msra.gmra.mrb[56].mxu0 %vm375_vm1, %v4003_v32 }
 0x9c2   :  { %3229 = vmatprep.mubr.msk.bf16.mxu0 %vm3485_vm0, %v3483_v1 }
 0xa0b   :  { %v1545_v50 = vpop.f32.mrb[36].mxu0 }
 0xa0c   :  { %v1894_v51 = vmul.f32 0.35355338, %v1545_v50  ;;  %v3177_v52 = vpop.f32.mrb[37].mxu0 }
 0xa0d   :  { %v1548_v53 = vpop.f32.mrb[38].mxu0 }
 0xa0e   :  { %v3178_v30 = vpop.f32.mrb[39].mxu0  ;;  %v1902_v36 = vsel %vm375_vm1, %v1894_v51, -inf }
 0xa0f   :  { %1903 = vmax.xlane.f32.xlu1 %v1902_v36 }
 0xa74   :  { %v1594_v0 = vpop.f32.mrb[40].mxu0 }
 0xa75   :  { %v1895_v2 = vmul.f32 0.35355338, %v1594_v0  ;;  %v3183_v54 = vpop.f32.mrb[41].mxu0 }
 0xa76   :  { %v1597_v42 = vpop.f32.mrb[42].mxu0 }
 0xa77   :  { %v3184_v56 = vpop.f32.mrb[43].mxu0  ;;  %v1905_v57 = vsel %vm375_vm1, %v1895_v2, -inf }
 0xa78   :  { %v1741_v3 = vpop.f32.mrb[48].mxu1  ;;  %1906 = vmax.xlane.f32.xlu0 %v1905_v57 }
 0xa79   :  { %v1898_v4 = vmul.f32 0.35355338, %v1741_v3  ;;  %v3201_v5 = vpop.f32.mrb[49].mxu1 }
 0xa7a   :  { %v1744_v55 = vpop.f32.mrb[50].mxu1 }
 0xa7b   :  { %v3202_v6 = vpop.f32.mrb[51].mxu1  ;;  %v1914_v58 = vsel %vm375_vm1, %v1898_v4, -inf }
 0xa7c   :  { %1915 = vmax.xlane.f32.xlu1 %v1914_v58  ;;  %v1643_v7 = vpop.f32.mrb[44].mxu0 }
 0xa7d   :  { %v4058_v59 = vmul.f32 0.35355338, %v1643_v7  ;;  %v3189_v60 = vpop.f32.mrb[45].mxu0 }
 0xa7e   :  { %v1646_v61 = vpop.f32.mrb[46].mxu0 }
 0xa7f   :  { %v3190_v62 = vpop.f32.mrb[47].mxu0  ;;  %v1908_v10 = vsel %vm375_vm1, %v4058_v59, -inf }
 0xa80   :  { %v1839_v11 = vpop.f32.mrb[52].mxu1  ;;  %1909 = vmax.xlane.f32.xlu0 %v1908_v10 }
 0xa81   :  { %v3213_v12 = vpop.f32.mrb[53].mxu1  ;;  %v1900_v44 = vmul.f32 0.35355338, %v1839_v11 }
 0xa82   :  { %v1842_v13 = vpop.f32.mrb[54].mxu1 }
 0xa83   :  { %v3214_v14 = vpop.f32.mrb[55].mxu1 }
 0xa84   :  { %v1692_v15 = vpop.f32.mrb[48].mxu0 }
 0xa85   :  { %v1897_v16 = vmul.f32 0.35355338, %v1692_v15  ;;  %v3195_v17 = vpop.f32.mrb[49].mxu0 }
 0xa86   :  { %v1695_v20 = vpop.f32.mrb[50].mxu0 }
 0xa87   :  { %v3196_v21 = vpop.f32.mrb[51].mxu0  ;;  %v1911_v18 = vsel %vm375_vm1, %v1897_v16, -inf }
 0xa88   :  { %1912 = vmax.xlane.f32.xlu0 %v1911_v18 }
 0xa8c   :  { %v1790_v24 = vpop.f32.mrb[52].mxu0 }
 0xa8d   :  { %v4063_v27 = vmul.f32 0.35355338, %v1790_v24  ;;  %1998 = vrot.lane.b32.xlu1 %v3975_v19, %s3486_s24  ;;  %v3207_v9 = vpop.f32.mrb[53].mxu0  ;;  %v1920_v19 = vsel %vm375_vm1, %v1900_v44, -inf }
 0xa8e   :  { %v1793_v31 = vpop.f32.mrb[54].mxu0 }
 0xa8f   :  { %v3208_v33 = vpop.f32.mrb[55].mxu0  ;;  %v1917_v35 = vsel %vm375_vm1, %v4063_v27, -inf }
 0xa90   :  { %1918 = vmax.xlane.f32.xlu0 %v1917_v35 }
 0xa94   :  { %v1888_v37 = vpop.f32.mrb[56].mxu0 }
 0xa95   :  { %v4069_v38 = vmul.f32 0.35355338, %v1888_v37  ;;  %v3219_v39 = vpop.f32.mrb[57].mxu0 }
 0xa96   :  { %v1891_v40 = vpop.f32.mrb[58].mxu0 }
 0xa97   :  { %v3220_v41 = vpop.f32.mrb[59].mxu0  ;;  %v1923_v43 = vsel %vm375_vm1, %v4069_v38, -inf }
 0xa98   :  { %1924 = vmax.xlane.f32.xlu0 %v1923_v43 }
 0xa9c   :  { %v1904_v45 = vpop.xlane.xlu1 %1903 }
 0xa9d   :  { %v1926_v46 = vsub.f32 %v1894_v51, %v1904_v45 }
 0xa9f   :  { %v1934_v34 = vmul.f32 1.442695, %v1926_v46 }
 0xaa1   :  { %3440 = vpow2.f32 %v1934_v34 }
 0xaab   :  { %v4080_v47 = vpop.eup %3440 }
 0xaac   :  { %v1950_v48 = vsel %vm375_vm1, %v4080_v47, 0.0 }
 0xaae   :  { %2046 = vrot.lane.b32.xlu0 %v3981_v23, %s3486_s24 }
 0xab1   :  { %1921 = vmax.xlane.f32.xlu1 %v1920_v19 }
 0xac2   :  { %2094 = vrot.lane.b32.xlu1 %v3979_v22, %s3486_s24 }
 0xac6   :  { %2142 = vrot.lane.b32.xlu1 %v3987_v25, %s3486_s24 }
 0xaea   :  { %1951 = vadd.xlane.f32.xlu1 %v1950_v48 }
 0xb05   :  { %v1907_v23 = vpop.xlane.xlu0 %1906 }
 0xb06   :  { %v1927_v49 = vsub.f32 %v1895_v2, %v1907_v23 }
 0xb08   :  { %v1936_v50 = vmul.f32 1.442695, %v1927_v49 }
 0xb09   :  { %v1916_v52 = vpop.xlane.xlu1 %1915 }
 0xb0a   :  { %3442 = vpow2.f32 %v1936_v50  ;;  %v1930_v53 = vsub.f32 %v1898_v4, %v1916_v52 }
 0xb0c   :  { %v1942_v22 = vmul.f32 1.442695, %v1930_v53 }
 0xb0d   :  { %v1999_v30 = vpop.permute.xlu1 %1998  ;;  %v1910_v51 = vpop.xlane.xlu0 %1909 }
 0xb0e   :  { %3444 = vpow2.f32 %v1942_v22  ;;  %v2004_v25 = vsel %vm851_vm2, %v1999_v30, 0  ;;  %v1928_v7 = vsub.f32 %v4058_v59, %v1910_v51 }
 0xb0f   :  { %3222 = vmatpush3.bf16.msra.mxu1 %v2004_v25 }
 0xb10   :  { %3233 = vmatprep.subr.bf16.mxu1 %v3483_v1  ;;  %v1938_v62 = vmul.f32 1.442695, %v1928_v7 }
 0xb14   :  { %v4086_v36 = vpop.eup %3442 }
 0xb15   :  { %v1913_v0 = vpop.xlane.xlu0 %1912  ;;  %v1953_v54 = vsel %vm375_vm1, %v4086_v36, 0.0 }
 0xb16   :  { %v1929_v2 = vsub.f32 %v1897_v16, %v1913_v0  ;;  %1954 = vadd.xlane.f32.xlu0 %v1953_v54 }
 0xb18   :  { %v4090_v42 = vpop.eup %3444  ;;  %v1940_v56 = vmul.f32 1.442695, %v1929_v2 }
 0xb19   :  { %v1962_v57 = vsel %vm375_vm1, %v4090_v42, 0.0 }
 0xb1a   :  { %3446 = vpow2.f32 %v1940_v56  ;;  %1963 = vadd.xlane.f32.xlu1 %v1962_v57 }
 0xb1d   :  { %v1919_v3 = vpop.xlane.xlu0 %1918 }
 0xb1e   :  { %v1931_v11 = vsub.f32 %v4063_v27, %v1919_v3 }
 0xb20   :  { %v1944_v12 = vmul.f32 1.442695, %v1931_v11 }
 0xb24   :  { %v3447_v4 = vpop.eup %3446 }
 0xb25   :  { %v1925_v5 = vpop.xlane.xlu0 %1924  ;;  %v1959_v55 = vsel %vm375_vm1, %v3447_v4, 0.0 }
 0xb26   :  { %1960 = vadd.xlane.f32.xlu0 %v1959_v55  ;;  %v1933_v13 = vsub.f32 %v4069_v38, %v1925_v5 }
 0xb28   :  { %v1948_v15 = vmul.f32 1.442695, %v1933_v13 }
 0xb29   :  { %v2047_v6 = vpop.permute.xlu0 %2046 }
 0xb2a   :  { %v2052_v58 = vsel %vm851_vm2, %v2047_v6, 0 }
 0xb2b   :  { %3228 = vmatpush3.bf16.msra.mxu0 %v2052_v58 }
 0xb2c   :  { %3239 = vmatprep.subr.bf16.mxu0 %v3483_v1 }
 0xb3c   :  { %2238 = vrot.lane.b32.xlu0 %v3995_v28, %s3486_s24 }
 0xb3e   :  { %v1922_v60 = vpop.xlane.xlu1 %1921 }
 0xb3f   :  { %v1932_v61 = vsub.f32 %v1900_v44, %v1922_v60 }
 0xb41   :  { %v1946_v10 = vmul.f32 1.442695, %v1932_v61 }
 0xb42   :  { %v2095_v24 = vpop.permute.xlu1 %2094 }
 0xb43   :  { %3448 = vpow2.f32 %v1946_v10  ;;  %v2100_v37 = vsel %vm851_vm2, %v2095_v24, 0 }
 0xb44   :  { %3450 = vpow2.f32 %v1938_v62 }
 0xb45   :  { %3452 = vpow2.f32 %v1944_v12 }
 0xb46   :  { %3454 = vpow2.f32 %v1948_v15  ;;  %v2143_v27 = vpop.permute.xlu1 %2142 }
 0xb47   :  { %v2148_v39 = vsel %vm851_vm2, %v2143_v27, 0 }
 0xb4d   :  { %v4102_v14 = vpop.eup %3448 }
 0xb4e   :  { %v1968_v28 = vsel %vm375_vm1, %v4102_v14, 0.0  ;;  %v3451_v16 = vpop.eup %3450 }
 0xb4f   :  { %1969 = vadd.xlane.f32.xlu1 %v1968_v28  ;;  %v1956_v59 = vsel %vm375_vm1, %v3451_v16, 0.0  ;;  %v4107_v17 = vpop.eup %3452 }
 0xb50   :  { %v1965_v20 = vsel %vm375_vm1, %v4107_v17, 0.0  ;;  %v4111_v21 = vpop.eup %3454 }
 0xb51   :  { %v1971_v18 = vsel %vm375_vm1, %v4111_v21, 0.0 }
 0xb53   :  { %1957 = vadd.xlane.f32.xlu1 %v1956_v59 }
 0xb5b   :  { %1966 = vadd.xlane.f32.xlu0 %v1965_v20 }
 0xb5f   :  { %1972 = vadd.xlane.f32.xlu0 %v1971_v18 }
 0xb64   :  { %2190 = vrot.lane.b32.xlu1 %v3989_v26, %s3486_s24 }
 0xb68   :  { %2286 = vrot.lane.b32.xlu1 %v3997_v29, %s3486_s24 }
 0xb75   :  { %2334 = vrot.lane.b32.xlu0 %v4003_v32, %s3486_s24 }
 0xb77   :  { %v1952_v9 = vpop.xlane.xlu1 %1951 }
 0xb78   :  { %3456 = vrcp.f32 %v1952_v9  ;;  %v3387_v9 = vld [vmem:[%s4291_s4 + $0x14] ss:$8 sps:$4 sm:$0xff]  }
 0xb82   :  { %v3457_v31 = vpop.eup %3456 }
 0xb83   :  { %v1982_v33 = vmul.f32 %v3457_v31, %v4080_v47 }
 0xb85   :  { %v1990_v35 = vpack.c.bf16 %v1982_v33, %v1982_v33 }
 0xb87   :  { %3224 = vmatmul.mubr.msk.bf16.vlgmr.msra.gmra.mrb[56].mxu1 %vm375_vm1, %v1990_v35 }
 0xb88   :  { %3234 = vmatpush3.bf16.msra.mxu1 %v2100_v37  ;;  %3235 = vmatprep.mubr.msk.bf16.mxu1 %vm3485_vm0, %v3483_v1 }
 0xb89   :  { %3245 = vmatprep.subr.bf16.mxu1 %v3483_v1 }
 0xba3   :  { %v1955_v26 = vpop.xlane.xlu0 %1954 }
 0xba4   :  { %3458 = vrcp.f32 %v1955_v26 }
 0xba7   :  { %v1964_v46 = vpop.xlane.xlu1 %1963 }
 0xbae   :  { %v3459_v29 = vpop.eup %3458 }
 0xbaf   :  { %v1983_v32 = vmul.f32 %v3459_v29, %v4086_v36 }
 0xbb1   :  { %v1991_v38 = vpack.c.bf16 %v1983_v32, %v1983_v32 }
 0xbb3   :  { %3230 = vmatmul.mubr.msk.bf16.vlgmr.msra.gmra.mrb[60].mxu0 %vm375_vm1, %v1991_v38  ;;  %v1961_v40 = vpop.xlane.xlu0 %1960 }
 0xbb4   :  { %3240 = vmatpush3.bf16.msra.mxu0 %v2148_v39  ;;  %3460 = vrcp.f32 %v1961_v40  ;;  %3241 = vmatprep.mubr.msk.bf16.mxu0 %vm3485_vm0, %v3483_v1 }
 0xbb5   :  { %3251 = vmatprep.subr.bf16.mxu0 %v3483_v1 }
 0xbb7   :  { %v2239_v44 = vpop.permute.xlu0 %2238 }
 0xbb8   :  { %v2244_v45 = vsel %vm851_vm2, %v2239_v44, 0 }
 0xbbe   :  { %v3461_v41 = vpop.eup %3460 }
 0xbbf   :  { %v1985_v43 = vmul.f32 %v3461_v41, %v3447_v4 }
 0xbc1   :  { %v1993_v19 = vpack.c.bf16 %v1985_v43, %v1985_v43 }
 0xbc3   :  { %3242 = vmatmul.mubr.msk.bf16.vlgmr.msra.gmra.mrb[64].mxu0 %vm375_vm1, %v1993_v19 }
 0xbc4   :  { %3252 = vmatpush3.bf16.msra.mxu0 %v2244_v45  ;;  %3253 = vmatprep.mubr.msk.bf16.mxu0 %vm3485_vm0, %v3483_v1 }
 0xbc5   :  { %3263 = vmatprep.subr.bf16.mxu0 %v3483_v1 }
 0xbdc   :  { %v1970_v34 = vpop.xlane.xlu1 %1969 }
 0xbe0   :  { %v1958_v47 = vpop.xlane.xlu1 %1957 }
 0xbe1   :  { %3462 = vrcp.f32 %v1958_v47 }
 0xbe2   :  { %3464 = vrcp.f32 %v1964_v46 }
 0xbe4   :  { %v2191_v52 = vpop.permute.xlu1 %2190 }
 0xbe5   :  { %v2196_v30 = vsel %vm851_vm2, %v2191_v52, 0 }
 0xbe8   :  { %v1967_v48 = vpop.xlane.xlu0 %1966  ;;  %v2287_v0 = vpop.permute.xlu1 %2286 }
 0xbe9   :  { %3466 = vrcp.f32 %v1967_v48  ;;  %v2292_v4 = vsel %vm851_vm2, %v2287_v0, 0 }
 0xbea   :  { %3468 = vrcp.f32 %v1970_v34 }
 0xbeb   :  { %v3463_v23 = vpop.eup %3462 }
 0xbec   :  { %v1984_v49 = vmul.f32 %v3463_v23, %v3451_v16  ;;  %v1973_v50 = vpop.xlane.xlu0 %1972  ;;  %v3465_v22 = vpop.eup %3464 }
 0xbed   :  { %3470 = vrcp.f32 %v1973_v50  ;;  %v1986_v25 = vmul.f32 %v3465_v22, %v4090_v42 }
 0xbee   :  { %v1992_v53 = vpack.c.bf16 %v1984_v49, %v1984_v49 }
 0xbef   :  { %v1994_v56 = vpack.c.bf16 %v1986_v25, %v1986_v25 }
 0xbf0   :  { %3236 = vmatmul.mubr.msk.bf16.vlgmr.msra.gmra.mrb[60].mxu1 %vm375_vm1, %v1992_v53  ;;  %v2335_v54 = vpop.permute.xlu0 %2334 }
 0xbf1   :  { %3246 = vmatpush3.bf16.msra.mxu1 %v2196_v30  ;;  %3247 = vmatprep.mubr.msk.bf16.mxu1 %vm3485_vm0, %v3483_v1  ;;  %v2340_v5 = vsel %vm851_vm2, %v2335_v54, 0 }
 0xbf2   :  { %3257 = vmatprep.subr.bf16.mxu1 %v3483_v1 }
 0xbf3   :  { %v3467_v51 = vpop.eup %3466 }
 0xbf4   :  { %v1987_v36 = vmul.f32 %v3467_v51, %v4107_v17  ;;  %v3469_v2 = vpop.eup %3468  ;;  %v3386_v17 = vld [vmem:[%s4291_s4 + $0x4] ss:$8 sps:$4 sm:$0xff]  }
 0xbf5   :  { %v1988_v42 = vmul.f32 %v3469_v2, %v4102_v14 }
 0xbf6   :  { %v1995_v57 = vpack.c.bf16 %v1987_v36, %v1987_v36 }
 0xbf7   :  { %v3471_v3 = vpop.eup %3470  ;;  %v1996_v6 = vpack.c.bf16 %v1988_v42, %v1988_v42 }
 0xbf8   :  { %3248 = vmatmul.mubr.msk.bf16.vlgmr.msra.gmra.mrb[64].mxu1 %vm375_vm1, %v1994_v56  ;;  %3254 = vmatmul.mubr.msk.bf16.vlgmr.msra.gmra.mrb[68].mxu0 %vm375_vm1, %v1995_v57  ;;  %v1989_v55 = vmul.f32 %v3471_v3, %v4111_v21  ;;  %v2839_v57 = vld [vmem:[%s4292_s7 + $0x3] ss:$0 sm:$0xff] }
 0xbf9   :  { %3258 = vmatpush3.bf16.msra.mxu1 %v2292_v4  ;;  %3264 = vmatpush3.bf16.msra.mxu0 %v2340_v5 }
 0xbfa   :  { %3259 = vmatprep.mubr.msk.bf16.mxu1 %vm3485_vm0, %v3483_v1  ;;  %3265 = vmatprep.mubr.msk.bf16.mxu0 %vm3485_vm0, %v3483_v1  ;;  %v1997_v58 = vpack.c.bf16 %v1989_v55, %v1989_v55 }
 0xbfb   :  { %3269 = vmatprep.subr.bf16.mxu1 %v3483_v1  ;;  %3277 = vmatprep.subr.bf16.mxu0 %v3483_v1 }
 0xc00   :  { %3260 = vmatmul.mubr.msk.bf16.vlgmr.msra.gmra.mrb[68].mxu1 %vm375_vm1, %v1996_v6  ;;  %3266 = vmatmul.mubr.msk.bf16.vlgmr.msra.gmra.mrb[72].mxu0 %vm375_vm1, %v1997_v58 }
 0xc01   :  { %3273 = vmatprep.mubr.msk.bf16.mxu1 %vm3485_vm0, %v3483_v1  ;;  %3293 = vmatprep.mubr.msk.bf16.mxu0 %vm3485_vm0, %v3483_v1 }
 0xc02   :  { %3270 = vmatpush3.bf16.msra.mxu1 %v3386_v17  ;;  %v3400_v17 = vld [vmem:[%s4293_s5 + $0x60] sm:$0xff]  }
 0xc03   :  { %3271 = vmatprep.subr.bf16.mxu1 %v3483_v1 }
 0xc06   :  { %3272 = vmatpush3.bf16.msra.mxu1 %v3387_v9 }
 0xc07   :  { %3297 = vmatprep.subr.bf16.mxu1 %v3483_v1 }
 0xc5a   :  { %v2040_v7 = vpop.f32.mrb[56].mxu1 }
 0xc5b   :  { %v3225_v60 = vpop.f32.mrb[57].mxu1 }
 0xc5c   :  { %v2043_v61 = vpop.f32.mrb[58].mxu1 }
 0xc5d   :  { %v3226_v62 = vpop.f32.mrb[59].mxu1 }
 0xc5e   :  { %v3390_v62 = vld [vmem:[%s4293_s5 + $0x10] sm:$0xff]  }
 0xc86   :  { %v2088_v10 = vpop.f32.mrb[60].mxu0 }
 0xc87   :  { %v3231_v11 = vpop.f32.mrb[61].mxu0 }
 0xc88   :  { %v2091_v12 = vpop.f32.mrb[62].mxu0  ;;  %v3392_v11 = vld [vmem:[%s4293_s5 + $0x20] sm:$0xff]  }
 0xc89   :  { %v3232_v13 = vpop.f32.mrb[63].mxu0  ;;  %v3393_v12 = vld [vmem:[%s4293_s5 + $0x28] sm:$0xff]  }
 0xc8a   :  { %v3394_v13 = vld [vmem:[%s4293_s5 + $0x30] sm:$0xff]  }
 0xc96   :  { %v2184_v14 = vpop.f32.mrb[64].mxu0 }
 0xc97   :  { %v3243_v15 = vpop.f32.mrb[65].mxu0 }
 0xc98   :  { %v2187_v28 = vpop.f32.mrb[66].mxu0  ;;  %v3396_v15 = vld [vmem:[%s4293_s5 + $0x40] sm:$0xff]  }
 0xc99   :  { %v3244_v16 = vpop.f32.mrb[67].mxu0  ;;  %v3397_v28 = vld [vmem:[%s4293_s5 + $0x48] sm:$0xff]  }
 0xc9a   :  { %v3398_v16 = vld [vmem:[%s4293_s5 + $0x50] sm:$0xff]  }
 0xcc3   :  { %v2136_v59 = vpop.f32.mrb[60].mxu1 }
 0xcc4   :  { %v3237_v20 = vpop.f32.mrb[61].mxu1 }
 0xcc5   :  { %v2139_v21 = vpop.f32.mrb[62].mxu1  ;;  %v3401_v20 = vld [vmem:[%s4293_s5 + $0x68] sm:$0xff]  }
 0xcc6   :  { %v3238_v18 = vpop.f32.mrb[63].mxu1 }
 0xccb   :  { %v2232_v24 = vpop.f32.mrb[64].mxu1  ;;  %v2280_v27 = vpop.f32.mrb[68].mxu0 }
 0xccc   :  { %v3343_v31 = vpack.i.bf16 %v2280_v27, %v2088_v10  ;;  %v3249_v33 = vpop.f32.mrb[65].mxu1  ;;  %v3255_v35 = vpop.f32.mrb[69].mxu0  ;;  %v3391_v10 = vld [vmem:[%s4293_s5 + $0x18] sm:$0xff]  }
 0xccd   :  { %v2235_v37 = vpop.f32.mrb[66].mxu1  ;;  %v2283_v26 = vpop.f32.mrb[70].mxu0 }
 0xcce   :  { %v3250_v29 = vpop.f32.mrb[67].mxu1  ;;  %3344 = vrot.lane.b32.xlu1 %v3343_v31, %s3490_s19  ;;  %v3256_v32 = vpop.f32.mrb[71].mxu0 }
 0xcd3   :  { %v2328_v38 = vpop.f32.mrb[68].mxu1  ;;  %v2376_v39 = vpop.f32.mrb[72].mxu0 }
 0xcd4   :  { %v3348_v40 = vpack.i.bf16 %v2328_v38, %v2136_v59  ;;  %v3353_v41 = vpack.i.bf16 %v2376_v39, %v2184_v14  ;;  %v3261_v43 = vpop.f32.mrb[69].mxu1  ;;  %v3267_v44 = vpop.f32.mrb[73].mxu0  ;;  %v3395_v14 = vld [vmem:[%s4293_s5 + $0x38] sm:$0xff]  }
 0xcd5   :  { %v2331_v19 = vpop.f32.mrb[70].mxu1  ;;  %v2379_v45 = vpop.f32.mrb[74].mxu0  ;;  %v3399_v59 = vld [vmem:[%s4293_s5 + $0x58] sm:$0xff]   ;;  %v2843_v44 = vld [vmem:[%s4292_s7 + $0x4] ss:$0 sm:$0xff] }
 0xcd6   :  { %v3262_v46 = vpop.f32.mrb[71].mxu1  ;;  %3349 = vrot.lane.b32.xlu0 %v3348_v40, %s3491_s20  ;;  %3354 = vrot.lane.b32.xlu1 %v3353_v41, %s3493_s10  ;;  %v3268_v34 = vpop.f32.mrb[75].mxu0 }
 0xd40   :  { %v3345_v47 = vpop.permute.xlu1 %3344 }
 0xd41   :  { %v3347_v48 = vunpack.i.h.bf16 %v3345_v47  ;;  %v3346_v23 = vunpack.i.l.bf16 %v3345_v47  ;;  %v2844_v47 = vld [vmem:[%s4292_s7 + $0x5] ss:$0 sm:$0xff] }
 0xd43   :  { %v2407_v25 = vsel %vm375_vm1, %v2232_v24, %v3347_v48  ;;  %v2406_v51 = vsel %vm375_vm1, %v2040_v7, %v3346_v23 }
 0xd48   :  { %v3350_v49 = vpop.permute.xlu0 %3349  ;;  %v3355_v50 = vpop.permute.xlu1 %3354 }
 0xd49   :  { %v3352_v52 = vunpack.i.h.bf16 %v3350_v49  ;;  %v3351_v53 = vunpack.i.l.bf16 %v3350_v49  ;;  %v3357_v22 = vunpack.i.h.bf16 %v3355_v50  ;;  %v3356_v30 = vunpack.i.l.bf16 %v3355_v50 }
 0xd4b   :  { %v2408_v36 = vsel %vm1243_vm3, %v2406_v51, %v3351_v53  ;;  %v2409_v0 = vsel %vm1243_vm3, %v2407_v25, %v3352_v52  ;;  %v3402_v52 = vld [vmem:[%s4293_s5 + $0x70] sm:$0xff]   ;;  %v3403_v53 = vld [vmem:[%s4293_s5 + $0x78] sm:$0xff]  }
 0xd4c   :  { %v2411_v54 = vsel %vm1246_vm4, %v2409_v0, %v3357_v22  ;;  %v2410_v2 = vsel %vm1246_vm4, %v2408_v36, %v3356_v30  ;;  %v2845_v22 = vld [vmem:[%s4292_s7 + $0x6] ss:$0 sm:$0xff] }
 0xd4d   :  { %v2412_v56 = vpack.c.bf16 %v2411_v54, %v2410_v2 }
 0xd4f   :  { %3274 = vmatmul.mubr.msk.bf16.vlgmr.msra.gmra.mrb[72].mxu1 %vm1266_vm5, %v2412_v56 }
 0xd50   :  { %3313 = vmatprep.mubr.msk.bf16.mxu1 %vm3485_vm0, %v3483_v1  ;;  %3298 = vmatpush3.bf16.msra.mxu1 %v3396_v15 }
 0xd51   :  { %3299 = vmatprep.subr.bf16.mxu1 %v3483_v1 }
 0xd54   :  { %3300 = vmatpush3.bf16.msra.mxu1 %v3397_v28 }
 0xd55   :  { %3301 = vmatprep.subr.bf16.mxu1 %v3483_v1 }
 0xd58   :  { %3302 = vmatpush3.bf16.msra.mxu1 %v3398_v16 }
 0xd59   :  { %3303 = vmatprep.subr.bf16.mxu1 %v3483_v1 }
 0xd5c   :  { %3304 = vmatpush3.bf16.msra.mxu1 %v3399_v59 }
 0xd5d   :  { %3305 = vmatprep.subr.bf16.mxu1 %v3483_v1 }
 0xd60   :  { %3306 = vmatpush3.bf16.msra.mxu1 %v3400_v17 }
 0xd61   :  { %3307 = vmatprep.subr.bf16.mxu1 %v3483_v1 }
 0xd64   :  { %3308 = vmatpush3.bf16.msra.mxu1 %v3401_v20 }
 0xd65   :  { %3309 = vmatprep.subr.bf16.mxu1 %v3483_v1 }
 0xd68   :  { %3310 = vmatpush3.bf16.msra.mxu1 %v3402_v52 }
 0xd69   :  { %3311 = vmatprep.subr.bf16.mxu1 %v3483_v1 }
 0xd6c   :  { %3312 = vmatpush3.bf16.msra.mxu1 %v3403_v53 }
 0xe22   :  { %v2462_v3 = vpop.f32.mrb[72].mxu1 }
 0xe23   :  { %v2463_v4 = vadd.f32 %v2839_v57, %v2462_v3  ;;  %v3275_v5 = vpop.f32.mrb[73].mxu1 }
 0xe24   :  { %v2465_v42 = vpop.f32.mrb[74].mxu1 }
 0xe25   :  { %v4187_v55 = vadd.f32 %v2463_v4, %v3958_v63  ;;  %v2466_v6 = vadd.f32 %v2839_v57, %v2465_v42  ;;  %v3276_v58 = vpop.f32.mrb[75].mxu1  ;;  %v3388_v63 = vld [vmem:[%s4293_s5] sm:$0xff]  }
 0xe26   :  { %3278 = vmatpush3.bf16.msra.mxu0 %v3388_v63 }
 0xe27   :  { %v4190_v7 = vadd.f32 %v2466_v6, %v3960_v8  ;;  %2473 = vadd.xlane.f32.xlu0 %v4187_v55  ;;  %v2479_v60 = vmul.f32 %v4187_v55, %v4187_v55  ;;  %3279 = vmatprep.subr.bf16.mxu0 %v3483_v1  ;;  %v3389_v8 = vld [vmem:[%s4293_s5 + $0x8] sm:$0xff]  }
 0xe29   :  { %2475 = vadd.xlane.f32.xlu1 %v4190_v7  ;;  %v2480_v61 = vmul.f32 %v4190_v7, %v4190_v7 }
 0xe2a   :  { %3280 = vmatpush3.bf16.msra.mxu0 %v3389_v8 }
 0xe2b   :  { %2481 = vadd.xlane.f32.xlu0 %v2479_v60  ;;  %3281 = vmatprep.subr.bf16.mxu0 %v3483_v1 }
 0xe2e   :  { %3282 = vmatpush3.bf16.msra.mxu0 %v3390_v62 }
 0xe2f   :  { %2483 = vadd.xlane.f32.xlu0 %v2480_v61  ;;  %3283 = vmatprep.subr.bf16.mxu0 %v3483_v1 }
 0xe32   :  { %3284 = vmatpush3.bf16.msra.mxu0 %v3391_v10 }
 0xe33   :  { %3285 = vmatprep.subr.bf16.mxu0 %v3483_v1 }
 0xe36   :  { %3286 = vmatpush3.bf16.msra.mxu0 %v3392_v11 }
 0xe37   :  { %3287 = vmatprep.subr.bf16.mxu0 %v3483_v1 }
 0xe3a   :  { %3288 = vmatpush3.bf16.msra.mxu0 %v3393_v12 }
 0xe3b   :  { %3289 = vmatprep.subr.bf16.mxu0 %v3483_v1 }
 0xe3e   :  { %3290 = vmatpush3.bf16.msra.mxu0 %v3394_v13 }
 0xe3f   :  { %3291 = vmatprep.subr.bf16.mxu0 %v3483_v1  ;;  %v2854_v1 = vld [vmem:[%s4292_s7 + $0x7] ss:$0 sm:$0xff] }
 0xe42   :  { %3292 = vmatpush3.bf16.msra.mxu0 %v3395_v14 }
 0xeb4   :  { %v2474_v21 = vpop.xlane.xlu0 %2473 }
 0xeb5   :  { %v2477_v18 = vmul.f32 0.03125, %v2474_v21 }
 0xeb6   :  { %v2476_v24 = vpop.xlane.xlu1 %2475 }
 0xeb7   :  { %v2487_v9 = vmul.f32 %v2477_v18, %v2477_v18  ;;  %v2478_v31 = vmul.f32 0.03125, %v2476_v24  ;;  %v2491_v40 = vsub.f32 %v4187_v55, %v2477_v18  ;;  %v2863_v24 = vld [vmem:[%s4292_s7 + $0x8] ss:$0 sm:$0xff] }
 0xeb8   :  { %v2482_v27 = vpop.xlane.xlu0 %2481 }
 0xeb9   :  { %v2485_v33 = vmul.f32 0.03125, %v2482_v27  ;;  %v2488_v26 = vmul.f32 %v2478_v31, %v2478_v31  ;;  %v2492_v19 = vsub.f32 %v4190_v7, %v2478_v31 }
 0xebb   :  { %v2489_v35 = vsub.f32 %v2485_v33, %v2487_v9  ;;  %v2864_v33 = vld [vmem:[%s4292_s7 + $0x9] ss:$0 sm:$0xff] }
 0xebc   :  { %v2484_v37 = vpop.xlane.xlu0 %2483 }
 0xebd   :  { %v2493_v29 = vadd.f32 1e-05, %v2489_v35  ;;  %v2486_v32 = vmul.f32 0.03125, %v2484_v37 }
 0xebf   :  { %3472 = vrsqrt.f32 %v2493_v29  ;;  %v2490_v38 = vsub.f32 %v2486_v32, %v2488_v26 }
 0xec1   :  { %v2494_v39 = vadd.f32 1e-05, %v2490_v38 }
 0xec3   :  { %3474 = vrsqrt.f32 %v2494_v39 }
 0xec9   :  { %v3473_v41 = vpop.eup %3472 }
 0xeca   :  { %v2497_v43 = vmul.f32 %v3473_v41, %v2491_v40 }
 0xecc   :  { %v2503_v34 = vmul.f32 %v2843_v44, %v2497_v43 }
 0xecd   :  { %v3475_v45 = vpop.eup %3474 }
 0xece   :  { %v2498_v46 = vmul.f32 %v3475_v45, %v2492_v19  ;;  %v2509_v23 = vadd.f32 %v2844_v47, %v2503_v34 }
 0xed0   :  { %v2504_v48 = vmul.f32 %v2843_v44, %v2498_v46 }
 0xed2   :  { %v2510_v49 = vadd.f32 %v2844_v47, %v2504_v48 }
 0xed4   :  { %v2511_v50 = vpack.c.bf16 %v2510_v49, %v2509_v23 }
 0xed6   :  { %3294 = vmatmul.mubr.bf16.vlgmr.msra.gmra.mrb[76].mxu0 %v2511_v50 }
 0xfa9   :  { %v2615_v30 = vpop.f32.mrb[76].mxu0 }
 0xfaa   :  { %v2616_v25 = vadd.f32 %v2845_v22, %v2615_v30  ;;  %v3295_v51 = vpop.f32.mrb[77].mxu0 }
 0xfab   :  { %v2618_v36 = vpop.f32.mrb[78].mxu0 }
 0xfac   :  { %v2619_v0 = vadd.f32 %v2845_v22, %v2618_v36  ;;  %v3296_v54 = vpop.f32.mrb[79].mxu0  ;;  %v2622_v2 = vmax.f32 %v2616_v25, 0.0 }
 0xfae   :  { %v2623_v56 = vmax.f32 %v2619_v0, 0.0 }
 0xfb0   :  { %v2624_v57 = vpack.c.bf16 %v2623_v56, %v2622_v2 }
 0xfb2   :  { %3314 = vmatmul.mubr.bf16.vlgmr.msra.gmra.mrb[76].mxu1 %v2624_v57 }
0x1085   :  { %v2728_v3 = vpop.f32.mrb[76].mxu1 }
0x1086   :  { %v2729_v4 = vadd.f32 %v2854_v1, %v2728_v3  ;;  %v3315_v5 = vpop.f32.mrb[77].mxu1 }
0x1087   :  { %v2731_v42 = vpop.f32.mrb[78].mxu1 }
0x1088   :  { %v2735_v55 = vadd.f32 %v2729_v4, %v2509_v23  ;;  %v2732_v6 = vadd.f32 %v2854_v1, %v2731_v42  ;;  %v3316_v58 = vpop.f32.mrb[79].mxu1 }
0x108a   :  { %v2736_v7 = vadd.f32 %v2732_v6, %v2510_v49  ;;  %2739 = vadd.xlane.f32.xlu0 %v2735_v55  ;;  %v2745_v60 = vmul.f32 %v2735_v55, %v2735_v55 }
0x108c   :  { %2741 = vadd.xlane.f32.xlu1 %v2736_v7  ;;  %v2746_v61 = vmul.f32 %v2736_v7, %v2736_v7 }
0x108e   :  { %2747 = vadd.xlane.f32.xlu0 %v2745_v60 }
0x1090   :  { %2749 = vadd.xlane.f32.xlu1 %v2746_v61 }
0x1117   :  { %v2740_v63 = vpop.xlane.xlu0 %2739 }
0x1118   :  { %v2743_v8 = vmul.f32 0.03125, %v2740_v63 }
0x1119   :  { %v2742_v62 = vpop.xlane.xlu1 %2741 }
0x111a   :  { %v2744_v10 = vmul.f32 0.03125, %v2742_v62  ;;  %v2753_v12 = vmul.f32 %v2743_v8, %v2743_v8  ;;  %v2757_v21 = vsub.f32 %v2735_v55, %v2743_v8 }
0x111b   :  { %v2748_v11 = vpop.xlane.xlu0 %2747 }
0x111c   :  { %v2751_v13 = vmul.f32 0.03125, %v2748_v11  ;;  %v2754_v15 = vmul.f32 %v2744_v10, %v2744_v10  ;;  %v2758_v27 = vsub.f32 %v2736_v7, %v2744_v10 }
0x111d   :  { %v2750_v14 = vpop.xlane.xlu1 %2749 }
0x111e   :  { %v2755_v28 = vsub.f32 %v2751_v13, %v2753_v12  ;;  %v2752_v16 = vmul.f32 0.03125, %v2750_v14 }
0x1120   :  { %v2759_v59 = vadd.f32 1e-05, %v2755_v28  ;;  %v2756_v17 = vsub.f32 %v2752_v16, %v2754_v15 }
0x1122   :  { %3476 = vrsqrt.f32 %v2759_v59  ;;  %v2760_v20 = vadd.f32 1e-05, %v2756_v17 }
0x1124   :  { %3478 = vrsqrt.f32 %v2760_v20 }
0x112c   :  { %v3477_v18 = vpop.eup %3476 }
0x112d   :  { %v2763_v9 = vmul.f32 %v3477_v18, %v2757_v21 }
0x112e   :  { %v3479_v31 = vpop.eup %3478 }
0x112f   :  { %v2769_v35 = vmul.f32 %v2863_v24, %v2763_v9  ;;  %v2764_v37 = vmul.f32 %v3479_v31, %v2758_v27 }
0x1131   :  { %v2775_v26 = vadd.f32 %v2864_v33, %v2769_v35  ;;  %v2770_v29 = vmul.f32 %v2863_v24, %v2764_v37 }
0x1133   :  { %2777 = vst [vmem:[%s4294_s8] sm:$0xff] %v2775_v26  ;;  %v2776_v32 = vadd.f32 %v2864_v33, %v2770_v29 }
0x1135   :  { %2778 = vst [vmem:[%s4294_s8 + $0x8] sm:$0xff] %v2776_v32 }

</bundles_post_ra>
